<compile_context>
chip_gen: v7x
topology: tpu7x:2x2x1
jax: 0.10.0
libtpu: 0.0.40
codegen_flags: <defaults>
</compile_context>

<pallas_src>
import jax
import jax.numpy as jnp
from jax import lax
from jax.experimental import pallas as pl
from jax.experimental.pallas import tpu as pltpu

EPS = 1e-5  # PyTorch BatchNorm default eps

_VMEM_LIMIT = None


def _vmem_limit_bytes():
    """Generation-aware scoped-VMEM budget (~75% of physical, capped)."""
    global _VMEM_LIMIT
    if _VMEM_LIMIT is None:
        cap = 128 * 1024 * 1024                      # v5e/v6e physical
        try:
            cap = int(pltpu.get_tpu_info().vmem_capacity_bytes)   # 64 MiB on v7x
        except Exception:
            pass
        _VMEM_LIMIT = int(min(cap * 3 // 4, 112 * 1024 * 1024))
    return _VMEM_LIMIT


def _pick_tiling(n, requested):
    """Lane-dense tiling: tile multiple of 128; prefer an exact divisor, else pad."""
    requested = max(128, (requested // 128) * 128)
    if n >= 128 and n % 128 == 0:
        t = min(requested, (n // 128) * 128)
        while t >= 128:
            if n % t == 0:
                return t, n
            t -= 128
    bn = min(requested, pl.cdiv(n, 128) * 128)
    return bn, pl.cdiv(n, bn) * bn


def enc_module_forward(x_nchw, params, *, block_n=1024, compute_dtype=jnp.bfloat16):
    """x_nchw: (B, C, H, W) float32.  Returns (out_nchw, se_logits)."""
    B, C, H, W = x_nchw.shape
    N = H * W
    D = C
    K = params['codewords'].shape[0]
    nclass = params['se_w'].shape[0]
    f32 = jnp.float32
    hp = lax.Precision.HIGHEST

    tn, n_pad = _pick_tiling(N, block_n)
    nt = n_pad // tn
    n_lane_tiles = tn // 128
    vmem_limit = _vmem_limit_bytes()
    use_approx_rcp = compute_dtype != jnp.float32

    # channels-first (B, C, N_pad): free reshape of NCHW; (padded) N in lanes.
    x = x_nchw.reshape(B, C, N).astype(f32)
    if n_pad != N:
        x = jnp.pad(x, ((0, 0), (0, 0), (0, n_pad - N)))
    x = x.astype(compute_dtype)        # bf16 streaming: x read by all 3 passes

    conv_w = params['conv_w'].astype(f32)                       # (D, D) [out, in]
    codewords = params['codewords'].astype(f32)                 # (K, D)
    s2 = (params['scale'].astype(f32) ** 2).reshape(K, 1)       # (K, 1)

    x_spec = pl.BlockSpec((None, C, tn), lambda b, n: (b, 0, n))

    def bcast(shape):
        return pl.BlockSpec(shape, lambda b, n: (0,) * len(shape))

    # -------------------- pass 1: BN2 batch statistics ----------------------
    def bn2_stats_kernel(x_ref, w_ref, sum_ref, sq_ref):
        @pl.when(pl.program_id(1) == 0)
        def _():
            sum_ref[...] = jnp.zeros_like(sum_ref)
            sq_ref[...] = jnp.zeros_like(sq_ref)

        h = jnp.dot(w_ref[...], x_ref[...], preferred_element_type=jnp.float32)
        hh = h * h
        s, q = sum_ref[...], sq_ref[...]
        # lane-wise partial accumulation: pure VPU adds on lane-aligned slices,
        # keeping the XLU/vex slots free for the conv matmul pushes.
        for j in range(n_lane_tiles):
            sl_ = slice(j * 128, (j + 1) * 128)
            s = s + h[:, sl_]
            q = q + hh[:, sl_]
        sum_ref[...] = s
        sq_ref[...] = q

    sum_p, sq_p = pl.pallas_call(
        bn2_stats_kernel,
        out_shape=(jax.ShapeDtypeStruct((B, D, 128), f32),
                   jax.ShapeDtypeStruct((B, D, 128), f32)),
        grid=(B, nt),
        in_specs=[x_spec, bcast((D, D))],
        out_specs=(pl.BlockSpec((None, D, 128), lambda b, n: (b, 0, 0)),
                   pl.BlockSpec((None, D, 128), lambda b, n: (b, 0, 0))),
        compiler_params=pltpu.CompilerParams(
            dimension_semantics=("parallel", "arbitrary"),
            vmem_limit_bytes=vmem_limit),
        cost_estimate=pl.CostEstimate(
            flops=2 * B * n_pad * D * C + 3 * B * n_pad * D,
            transcendentals=0,
            bytes_accessed=x.dtype.itemsize * B * n_pad * C
            + 4 * (D * D + 2 * B * D * 128)),
    )(x, conv_w.astype(compute_dtype))

    cnt = float(B * N)                         # padded x columns are zero in h
    mean2 = jnp.sum(sum_p, axis=(0, 2)) / cnt                       # (D,)
    var2 = jnp.maximum(jnp.sum(sq_p, axis=(0, 2)) / cnt - mean2 ** 2, 0.0)
    # TODO(synk): single-pass E[h^2]-E[h]^2 variance; running stats not updated.
    rstd2 = lax.rsqrt(var2 + EPS)
    g2 = params['bn2_g'].astype(f32)
    b2 = params['bn2_b'].astype(f32)
    bn2_scale = (g2 * rstd2).reshape(D, 1)
    bn2_shift = (b2 - g2 * mean2 * rstd2).reshape(D, 1)

    # Fold constants:  h = relu((bn2_scale*W) @ x + bn2_shift)
    #                  sl = s2*||h||^2 + (-2*s2*C)@h + s2*||C||^2
    conv_w2 = (bn2_scale * conv_w).astype(compute_dtype)            # (D, D)
    cwf = (-2.0 * s2 * codewords).astype(compute_dtype)             # (K, D)
    cn2 = jnp.sum(codewords * codewords, axis=1, keepdims=True)     # (K, 1)
    sl_bias = s2 * cn2                                              # (K, 1)

    # -------- pass 2: encoding soft-assignment + per-batch aggregation ------
    def encode_kernel(x_ref, w_ref, shift_ref, cwf_ref, s2_ref, bias_ref,
                      eacc_ref, aacc_ref):
        n = pl.program_id(1)

        @pl.when(n == 0)
        def _():
            eacc_ref[...] = jnp.zeros_like(eacc_ref)
            aacc_ref[...] = jnp.zeros_like(aacc_ref)

        # 1x1 conv with folded BN2 scale + shift + ReLU  (h: (D, TN) f32)
        h = jnp.dot(w_ref[...], x_ref[...], preferred_element_type=jnp.float32)
        h = jnp.maximum(h + shift_ref[...], 0.0)

        hn2 = jnp.sum(h * h, axis=0, keepdims=True)                 # (1, TN) f32
        hb = h.astype(x_ref.dtype)
        hc = jnp.dot(cwf_ref[...], hb,
                     preferred_element_type=jnp.float32)            # (K, TN)
        sl = s2_ref[...] * hn2 + hc + bias_ref[...]                 # (K, TN) f32

        # per-pixel softmax over the K codewords (sublane axis)
        m = jnp.max(sl, axis=0, keepdims=True)
        p = jnp.exp(sl - m)
        inv = pl.reciprocal(jnp.sum(p, axis=0, keepdims=True), approx=use_approx_rcp)
        A = p * inv                                                 # (K, TN)

        if n_pad != N:   # static: only traced when padding exists
            col = n * tn + lax.broadcasted_iota(jnp.int32, (1, tn), 1)
            A = jnp.where(col < N, A, 0.0)

        # E-part: sum_n A[k, n] * h[:, n]   (contraction over the lane axis of
        # both operands).  TODO(synk): check Mosaic lowering for a hidden
        # per-tile transpose landing on the vex slots.
        eacc_ref[...] += lax.dot_general(
            A.astype(hb.dtype), hb, (((1,), (1,)), ((), ())),
            preferred_element_type=jnp.float32)                     # (K, D)
        aacc_ref[...] += jnp.sum(A, axis=1, keepdims=True)          # (K, 1)

    eacc, aacc = pl.pallas_call(
        encode_kernel,
        out_shape=(jax.ShapeDtypeStruct((B, K, D), f32),
                   jax.ShapeDtypeStruct((B, K, 1), f32)),
        grid=(B, nt),
        in_specs=[x_spec,
                  bcast((D, D)),       # folded conv weight
                  bcast((D, 1)),       # bn2 shift
                  bcast((K, D)),       # -2 * s2 * codewords
                  bcast((K, 1)),       # s2
                  bcast((K, 1))],      # s2 * ||C||^2
        out_specs=(pl.BlockSpec((None, K, D), lambda b, n: (b, 0, 0)),
                   pl.BlockSpec((None, K, 1), lambda b, n: (b, 0, 0))),
        compiler_params=pltpu.CompilerParams(
            dimension_semantics=("parallel", "arbitrary"),
            vmem_limit_bytes=vmem_limit),
        cost_estimate=pl.CostEstimate(
            flops=2 * B * n_pad * D * (C + 2 * K) + 12 * B * n_pad * K,
            transcendentals=B * n_pad * (K + 1),
            bytes_accessed=x.dtype.itemsize * B * n_pad * C
            + 4 * (2 * D * D + 2 * K * D + B * K * (D + 1))),
    )(x, conv_w2, bn2_shift, cwf, s2, sl_bias)

    # ---- tiny (B, K, D) epilogue in plain JAX: BN1 + ReLU + mean_K + heads --
    E = eacc - aacc * codewords[None]                               # (B, K, D)
    mu1 = jnp.mean(E, axis=(0, 2), keepdims=True)
    var1 = jnp.mean((E - mu1) ** 2, axis=(0, 2), keepdims=True)
    En = (E - mu1) * lax.rsqrt(var1 + EPS) \
        * params['bn1_g'].astype(f32)[None, :, None] \
        + params['bn1_b'].astype(f32)[None, :, None]
    En = jnp.maximum(En, 0.0)
    en = jnp.mean(En, axis=1)                                       # (B, D)
    gamma = jax.nn.sigmoid(
        jnp.dot(en, params['fc_w'].astype(f32).T, precision=hp)
        + params['fc_b'].astype(f32))                               # (B, D)
    se_logits = jnp.dot(en, params['se_w'].astype(f32).T, precision=hp) \
        + params['se_b'].astype(f32)                                # (B, nclass)

    # ------------- pass 3: SE modulation  out = relu(x * (1 + gamma)) -------
    def modulate_kernel(x_ref, scale_ref, out_ref):
        out_ref[...] = jnp.maximum(
            x_ref[...].astype(jnp.float32) * scale_ref[...], 0.0
        ).astype(out_ref.dtype)

    scale_mod = (1.0 + gamma)[:, :, None].astype(f32)               # (B, D, 1)
    out = pl.pallas_call(
        modulate_kernel,
        out_shape=jax.ShapeDtypeStruct((B, C, n_pad), f32),
        grid=(B, nt),
        in_specs=[x_spec, pl.BlockSpec((None, D, 1), lambda b, n: (b, 0, 0))],
        out_specs=pl.BlockSpec((None, C, tn), lambda b, n: (b, 0, n)),
        compiler_params=pltpu.CompilerParams(
            dimension_semantics=("parallel", "parallel"),
            vmem_limit_bytes=vmem_limit),
        cost_estimate=pl.CostEstimate(
            flops=2 * B * n_pad * D,
            transcendentals=0,
            bytes_accessed=(x.dtype.itemsize + 4) * B * n_pad * C + 4 * B * D),
    )(x, scale_mod)

    if n_pad != N:
        out = out[:, :, :N]
    return out.reshape(B, C, H, W), se_logits


# ------------------------- pure-JAX reference (torch-mirror) -----------------
def reference(x, p):
    hp = lax.Precision.HIGHEST
    B, C, H, W = x.shape
    N = H * W
    h = jnp.einsum('oc,bchw->bohw', p['conv_w'], x, precision=hp)
    mu = h.mean(axis=(0, 2, 3), keepdims=True)
    var = ((h - mu) ** 2).mean(axis=(0, 2, 3), keepdims=True)
    h = (h - mu) / jnp.sqrt(var + EPS) * p['bn2_g'][None, :, None, None] \
        + p['bn2_b'][None, :, None, None]
    h = jax.nn.relu(h)
    X = jnp.transpose(h.reshape(B, C, N), (0, 2, 1))                  # (B, N, D)
    Cw, S = p['codewords'], p['scale']
    diff = X[:, :, None, :] - Cw[None, None, :, :]                    # (B, N, K, D)
    SL = jnp.sum((S[None, None, :, None] * diff) ** 2, axis=3)
    A = jax.nn.softmax(SL, axis=2)
    E = jnp.sum(A[..., None] * diff, axis=1)                          # (B, K, D)
    mu1 = E.mean(axis=(0, 2), keepdims=True)
    var1 = ((E - mu1) ** 2).mean(axis=(0, 2), keepdims=True)
    En = (E - mu1) / jnp.sqrt(var1 + EPS) * p['bn1_g'][None, :, None] \
        + p['bn1_b'][None, :, None]
    En = jax.nn.relu(En)
    en = En.mean(axis=1)                                              # (B, D)
    gamma = jax.nn.sigmoid(jnp.dot(en, p['fc_w'].T, precision=hp) + p['fc_b'])
    out1 = jax.nn.relu(x + x * gamma[:, :, None, None])
    out2 = jnp.dot(en, p['se_w'].T, precision=hp) + p['se_b']
    return out1, out2


if __name__ == "__main__":
    B, C, H, W = 2, 4, 16, 16
    K, nclass = 32, 8

    key = jax.random.PRNGKey(0)
    ks = jax.random.split(key, 12)
    std1 = 1.0 / (K * C) ** 0.5
    params = dict(
        conv_w=jax.random.uniform(ks[0], (C, C), jnp.float32, -0.5, 0.5),
        bn2_g=jax.random.uniform(ks[1], (C,), jnp.float32, 0.5, 1.5),
        bn2_b=jax.random.uniform(ks[2], (C,), jnp.float32, -0.1, 0.1),
        codewords=jax.random.uniform(ks[3], (K, C), jnp.float32, -std1, std1),
        scale=jax.random.uniform(ks[4], (K,), jnp.float32, -1.0, 0.0),
        bn1_g=jax.random.uniform(ks[5], (K,), jnp.float32, 0.5, 1.5),
        bn1_b=jax.random.uniform(ks[6], (K,), jnp.float32, -0.1, 0.1),
        fc_w=jax.random.uniform(ks[7], (C, C), jnp.float32, -0.5, 0.5),
        fc_b=jax.random.uniform(ks[8], (C,), jnp.float32, -0.1, 0.1),
        se_w=jax.random.uniform(ks[9], (nclass, C), jnp.float32, -0.5, 0.5),
        se_b=jax.random.uniform(ks[10], (nclass,), jnp.float32, -0.1, 0.1),
    )
    x = jax.random.normal(ks[11], (B, C, H, W), jnp.float32)

    fwd = jax.jit(enc_module_forward, static_argnames=("block_n", "compute_dtype"))
    ref1, ref2 = reference(x, params)

    # Structure / semantics check: f32 streaming and f32 MXU operands.
    # (1e-2 leaves headroom for possible bf16 rounding of f32 MXU operands at
    #  default matmul precision on some TPU generations.)
    o1_f32, o2_f32 = fwd(x, params, compute_dtype=jnp.float32)
    jax.block_until_ready((o1_f32, o2_f32))
    assert o1_f32.shape == (B, C, H, W) and o2_f32.shape == (B, nclass)
    assert jnp.allclose(o1_f32, ref1, atol=1e-2, rtol=1e-2)
    assert jnp.allclose(o2_f32, ref2, atol=1e-2, rtol=1e-2)

    # Default fast path: bf16 x streaming + bf16 MXU operands (f32 accumulators).
    out1, out2 = fwd(x, params)
    jax.block_until_ready((out1, out2))
    assert out1.shape == (B, C, H, W) and out2.shape == (B, nclass)
    assert jnp.allclose(out1, ref1, atol=2.5e-2, rtol=2.5e-2)
    assert jnp.allclose(out2, ref2, atol=2.5e-2, rtol=2.5e-2)

    print("KERNEL_OK")
</pallas_src>

<mosaic_0001>
module attributes {stable_mosaic.version = 11 : i64} {
  func.func @bn2_stats_kernel(%arg0: i32, %arg1: i32, %arg2: memref<1x4x256xf32, #tpu.memory_space<vmem>>, %arg3: memref<4x4xf32, #tpu.memory_space<vmem>>, %arg4: memref<1x4x128xf32, #tpu.memory_space<vmem>>, %arg5: memref<1x4x128xf32, #tpu.memory_space<vmem>>) attributes {dimension_semantics = [#tpu.dimension_semantics<parallel>, #tpu.dimension_semantics<arbitrary>], iteration_bounds = array<i64: 2, 1>, scalar_prefetch = 0 : i64, scratch_operands = 0 : i64, tpu.core_type = #tpu.core_type<tc>, window_params = [{transform_indices = @transform_0, window_bounds = array<i64: 1, 4, 256>}, {pipeline_mode = #tpu.pipeline_mode<synchronous>, transform_indices = @transform_1, window_bounds = array<i64: 4, 4>}, {transform_indices = @transform_2, window_bounds = array<i64: 1, 4, 128>}, {transform_indices = @transform_3, window_bounds = array<i64: 1, 4, 128>}]} {
    %c0_i32 = arith.constant 0 : i32
    %0 = arith.cmpi eq, %arg1, %c0_i32 : i32
    %1 = arith.extui %0 : i1 to i32
    %c0_i32_0 = arith.constant 0 : i32
    %2 = arith.cmpi ne, %1, %c0_i32_0 : i32
    scf.if %2 {
      %cst_17 = arith.constant 0.000000e+00 : f32
      %26 = vector.broadcast %cst_17 : f32 to vector<4x128xf32>
      %c0_18 = arith.constant 0 : index
      %c0_19 = arith.constant 0 : index
      %c0_20 = arith.constant 0 : index
      %27 = vector.load %arg4[%c0_18, %c0_19, %c0_20] : memref<1x4x128xf32, #tpu.memory_space<vmem>>, vector<1x4x128xf32>
      %28 = vector.shape_cast %27 : vector<1x4x128xf32> to vector<4x128xf32>
      %29 = vector.shape_cast %26 : vector<4x128xf32> to vector<1x4x128xf32>
      tpu.vector_store %arg4[%c0_18, %c0_19, %c0_20], %29 {strides = array<i32>} : memref<1x4x128xf32, #tpu.memory_space<vmem>>, vector<1x4x128xf32>,
      %cst_21 = arith.constant 0.000000e+00 : f32
      %30 = vector.broadcast %cst_21 : f32 to vector<4x128xf32>
      %c0_22 = arith.constant 0 : index
      %c0_23 = arith.constant 0 : index
      %c0_24 = arith.constant 0 : index
      %31 = vector.load %arg5[%c0_22, %c0_23, %c0_24] : memref<1x4x128xf32, #tpu.memory_space<vmem>>, vector<1x4x128xf32>
      %32 = vector.shape_cast %31 : vector<1x4x128xf32> to vector<4x128xf32>
      %33 = vector.shape_cast %30 : vector<4x128xf32> to vector<1x4x128xf32>
      tpu.vector_store %arg5[%c0_22, %c0_23, %c0_24], %33 {strides = array<i32>} : memref<1x4x128xf32, #tpu.memory_space<vmem>>, vector<1x4x128xf32>,
    } else {
    }
    %c0 = arith.constant 0 : index
    %c0_1 = arith.constant 0 : index
    %3 = vector.load %arg3[%c0, %c0_1] : memref<4x4xf32, #tpu.memory_space<vmem>>, vector<4x4xf32>
    %c0_2 = arith.constant 0 : index
    %c0_3 = arith.constant 0 : index
    %c0_4 = arith.constant 0 : index
    %4 = vector.load %arg2[%c0_2, %c0_3, %c0_4] : memref<1x4x256xf32, #tpu.memory_space<vmem>>, vector<1x4x256xf32>
    %5 = vector.shape_cast %4 : vector<1x4x256xf32> to vector<4x256xf32>
    %cst = arith.constant dense<0.000000e+00> : vector<4x256xf32>
    %6 = tpu.matmul %3, %5, %cst {dimension_numbers = #tpu.dot_dimension_numbers<[1], [0], [0], [1], [0, 0, 1, 1], [], []>} : vector<4x4xf32>, vector<4x256xf32>, vector<4x256xf32> -> vector<4x256xf32>
    %7 = arith.mulf %6, %6 : vector<4x256xf32>
    %c0_5 = arith.constant 0 : index
    %c0_6 = arith.constant 0 : index
    %c0_7 = arith.constant 0 : index
    %8 = vector.load %arg4[%c0_5, %c0_6, %c0_7] : memref<1x4x128xf32, #tpu.memory_space<vmem>>, vector<1x4x128xf32>
    %9 = vector.shape_cast %8 : vector<1x4x128xf32> to vector<4x128xf32>
    %c0_8 = arith.constant 0 : index
    %c0_9 = arith.constant 0 : index
    %c0_10 = arith.constant 0 : index
    %10 = vector.load %arg5[%c0_8, %c0_9, %c0_10] : memref<1x4x128xf32, #tpu.memory_space<vmem>>, vector<1x4x128xf32>
    %11 = vector.shape_cast %10 : vector<1x4x128xf32> to vector<4x128xf32>
    %12 = vector.extract_strided_slice %6 {offsets = [0, 0], sizes = [4, 128], strides = [1, 1]} : vector<4x256xf32> to vector<4x128xf32>
    %13 = arith.addf %9, %12 : vector<4x128xf32>
    %14 = vector.extract_strided_slice %7 {offsets = [0, 0], sizes = [4, 128], strides = [1, 1]} : vector<4x256xf32> to vector<4x128xf32>
    %15 = arith.addf %11, %14 : vector<4x128xf32>
    %16 = vector.extract_strided_slice %6 {offsets = [0, 128], sizes = [4, 128], strides = [1, 1]} : vector<4x256xf32> to vector<4x128xf32>
    %17 = arith.addf %13, %16 : vector<4x128xf32>
    %18 = vector.extract_strided_slice %7 {offsets = [0, 128], sizes = [4, 128], strides = [1, 1]} : vector<4x256xf32> to vector<4x128xf32>
    %19 = arith.addf %15, %18 : vector<4x128xf32>
    %c0_11 = arith.constant 0 : index
    %c0_12 = arith.constant 0 : index
    %c0_13 = arith.constant 0 : index
    %20 = vector.load %arg4[%c0_11, %c0_12, %c0_13] : memref<1x4x128xf32, #tpu.memory_space<vmem>>, vector<1x4x128xf32>
    %21 = vector.shape_cast %20 : vector<1x4x128xf32> to vector<4x128xf32>
    %22 = vector.shape_cast %17 : vector<4x128xf32> to vector<1x4x128xf32>
    tpu.vector_store %arg4[%c0_11, %c0_12, %c0_13], %22 {strides = array<i32>} : memref<1x4x128xf32, #tpu.memory_space<vmem>>, vector<1x4x128xf32>,
    %c0_14 = arith.constant 0 : index
    %c0_15 = arith.constant 0 : index
    %c0_16 = arith.constant 0 : index
    %23 = vector.load %arg5[%c0_14, %c0_15, %c0_16] : memref<1x4x128xf32, #tpu.memory_space<vmem>>, vector<1x4x128xf32>
    %24 = vector.shape_cast %23 : vector<1x4x128xf32> to vector<4x128xf32>
    %25 = vector.shape_cast %19 : vector<4x128xf32> to vector<1x4x128xf32>
    tpu.vector_store %arg5[%c0_14, %c0_15, %c0_16], %25 {strides = array<i32>} : memref<1x4x128xf32, #tpu.memory_space<vmem>>, vector<1x4x128xf32>,
    return
  }
  func.func @transform_0(%arg0: i32, %arg1: i32) -> (i32, i32, i32) {
    %c0_i32 = arith.constant 0 : i32
    %c0_i32_0 = arith.constant 0 : i32
    return %arg0, %c0_i32, %arg1 : i32, i32, i32
  }
  func.func @transform_1(%arg0: i32, %arg1: i32) -> (i32, i32) {
    %c0_i32 = arith.constant 0 : i32
    %c0_i32_0 = arith.constant 0 : i32
    %c0_i32_1 = arith.constant 0 : i32
    return %c0_i32, %c0_i32_0 : i32, i32
  }
  func.func @transform_2(%arg0: i32, %arg1: i32) -> (i32, i32, i32) {
    %c0_i32 = arith.constant 0 : i32
    %c0_i32_0 = arith.constant 0 : i32
    %c0_i32_1 = arith.constant 0 : i32
    return %arg0, %c0_i32, %c0_i32_0 : i32, i32, i32
  }
  func.func @transform_3(%arg0: i32, %arg1: i32) -> (i32, i32, i32) {
    %c0_i32 = arith.constant 0 : i32
    %c0_i32_0 = arith.constant 0 : i32
    %c0_i32_1 = arith.constant 0 : i32
    return %arg0, %c0_i32, %c0_i32_0 : i32, i32, i32
  }
}

module attributes {stable_mosaic.version = 11 : i64} {
  func.func @encode_kernel(%arg0: i32, %arg1: i32, %arg2: memref<1x4x256xf32, #tpu.memory_space<vmem>>, %arg3: memref<4x4xf32, #tpu.memory_space<vmem>>, %arg4: memref<4x1xf32, #tpu.memory_space<vmem>>, %arg5: memref<32x4xf32, #tpu.memory_space<vmem>>, %arg6: memref<32x1xf32, #tpu.memory_space<vmem>>, %arg7: memref<32x1xf32, #tpu.memory_space<vmem>>, %arg8: memref<1x32x4xf32, #tpu.memory_space<vmem>>, %arg9: memref<1x32x1xf32, #tpu.memory_space<vmem>>) attributes {dimension_semantics = [#tpu.dimension_semantics<parallel>, #tpu.dimension_semantics<arbitrary>], iteration_bounds = array<i64: 2, 1>, scalar_prefetch = 0 : i64, scratch_operands = 0 : i64, tpu.core_type = #tpu.core_type<tc>, window_params = [{transform_indices = @transform_0, window_bounds = array<i64: 1, 4, 256>}, {pipeline_mode = #tpu.pipeline_mode<synchronous>, transform_indices = @transform_1, window_bounds = array<i64: 4, 4>}, {pipeline_mode = #tpu.pipeline_mode<synchronous>, transform_indices = @transform_2, window_bounds = array<i64: 4, 1>}, {pipeline_mode = #tpu.pipeline_mode<synchronous>, transform_indices = @transform_3, window_bounds = array<i64: 32, 4>}, {pipeline_mode = #tpu.pipeline_mode<synchronous>, transform_indices = @transform_4, window_bounds = array<i64: 32, 1>}, {pipeline_mode = #tpu.pipeline_mode<synchronous>, transform_indices = @transform_5, window_bounds = array<i64: 32, 1>}, {transform_indices = @transform_6, window_bounds = array<i64: 1, 32, 4>}, {transform_indices = @transform_7, window_bounds = array<i64: 1, 32, 1>}]} {
    %c0_i32 = arith.constant 0 : i32
    %0 = arith.cmpi eq, %arg1, %c0_i32 : i32
    %1 = arith.extui %0 : i1 to i32
    %c0_i32_0 = arith.constant 0 : i32
    %2 = arith.cmpi ne, %1, %c0_i32_0 : i32
    scf.if %2 {
      %cst_32 = arith.constant 0.000000e+00 : f32
      %50 = vector.broadcast %cst_32 : f32 to vector<32x4xf32>
      %c0_33 = arith.constant 0 : index
      %c0_34 = arith.constant 0 : index
      %c0_35 = arith.constant 0 : index
      %51 = vector.load %arg8[%c0_33, %c0_34, %c0_35] : memref<1x32x4xf32, #tpu.memory_space<vmem>>, vector<1x32x4xf32>
      %52 = vector.shape_cast %51 : vector<1x32x4xf32> to vector<32x4xf32>
      %53 = vector.shape_cast %50 : vector<32x4xf32> to vector<1x32x4xf32>
      tpu.vector_store %arg8[%c0_33, %c0_34, %c0_35], %53 {strides = array<i32>} : memref<1x32x4xf32, #tpu.memory_space<vmem>>, vector<1x32x4xf32>,
      %cst_36 = arith.constant 0.000000e+00 : f32
      %54 = vector.broadcast %cst_36 : f32 to vector<32x1xf32>
      %c0_37 = arith.constant 0 : index
      %c0_38 = arith.constant 0 : index
      %c0_39 = arith.constant 0 : index
      %55 = vector.load %arg9[%c0_37, %c0_38, %c0_39] : memref<1x32x1xf32, #tpu.memory_space<vmem>>, vector<1x32x1xf32>
      %56 = vector.shape_cast %55 : vector<1x32x1xf32> to vector<32x1xf32>
      %57 = vector.shape_cast %54 : vector<32x1xf32> to vector<1x32x1xf32>
      tpu.vector_store %arg9[%c0_37, %c0_38, %c0_39], %57 {strides = array<i32>} : memref<1x32x1xf32, #tpu.memory_space<vmem>>, vector<1x32x1xf32>,
    } else {
    }
    %c0 = arith.constant 0 : index
    %c0_1 = arith.constant 0 : index
    %3 = vector.load %arg3[%c0, %c0_1] : memref<4x4xf32, #tpu.memory_space<vmem>>, vector<4x4xf32>
    %c0_2 = arith.constant 0 : index
    %c0_3 = arith.constant 0 : index
    %c0_4 = arith.constant 0 : index
    %4 = vector.load %arg2[%c0_2, %c0_3, %c0_4] : memref<1x4x256xf32, #tpu.memory_space<vmem>>, vector<1x4x256xf32>
    %5 = vector.shape_cast %4 : vector<1x4x256xf32> to vector<4x256xf32>
    %cst = arith.constant dense<0.000000e+00> : vector<4x256xf32>
    %6 = tpu.matmul %3, %5, %cst {dimension_numbers = #tpu.dot_dimension_numbers<[1], [0], [0], [1], [0, 0, 1, 1], [], []>} : vector<4x4xf32>, vector<4x256xf32>, vector<4x256xf32> -> vector<4x256xf32>
    %c0_5 = arith.constant 0 : index
    %c0_6 = arith.constant 0 : index
    %7 = vector.load %arg4[%c0_5, %c0_6] : memref<4x1xf32, #tpu.memory_space<vmem>>, vector<4x1xf32>
    %8 = vector.broadcast %7 : vector<4x1xf32> to vector<4x256xf32>
    %9 = arith.addf %6, %8 : vector<4x256xf32>
    %cst_7 = arith.constant 0.000000e+00 : f32
    %10 = vector.broadcast %cst_7 : f32 to vector<4x256xf32>
    %11 = arith.maximumf %9, %10 : vector<4x256xf32>
    %12 = arith.mulf %11, %11 : vector<4x256xf32>
    %cst_8 = arith.constant dense<0.000000e+00> : vector<256xf32>
    %13 = vector.multi_reduction <add>, %12, %cst_8 [0] : vector<4x256xf32> to vector<256xf32>
    %14 = vector.shape_cast %13 : vector<256xf32> to vector<1x256xf32>
    %c0_9 = arith.constant 0 : index
    %c0_10 = arith.constant 0 : index
    %15 = vector.load %arg5[%c0_9, %c0_10] : memref<32x4xf32, #tpu.memory_space<vmem>>, vector<32x4xf32>
    %cst_11 = arith.constant dense<0.000000e+00> : vector<32x256xf32>
    %16 = tpu.matmul %15, %11, %cst_11 {dimension_numbers = #tpu.dot_dimension_numbers<[1], [0], [0], [1], [0, 0, 1, 1], [], []>} : vector<32x4xf32>, vector<4x256xf32>, vector<32x256xf32> -> vector<32x256xf32>
    %c0_12 = arith.constant 0 : index
    %c0_13 = arith.constant 0 : index
    %17 = vector.load %arg6[%c0_12, %c0_13] : memref<32x1xf32, #tpu.memory_space<vmem>>, vector<32x1xf32>
    %18 = vector.broadcast %17 : vector<32x1xf32> to vector<32x256xf32>
    %19 = vector.broadcast %14 : vector<1x256xf32> to vector<32x256xf32>
    %20 = arith.mulf %18, %19 : vector<32x256xf32>
    %21 = arith.addf %20, %16 : vector<32x256xf32>
    %c0_14 = arith.constant 0 : index
    %c0_15 = arith.constant 0 : index
    %22 = vector.load %arg7[%c0_14, %c0_15] : memref<32x1xf32, #tpu.memory_space<vmem>>, vector<32x1xf32>
    %23 = vector.broadcast %22 : vector<32x1xf32> to vector<32x256xf32>
    %24 = arith.addf %21, %23 : vector<32x256xf32>
    %cst_16 = arith.constant dense<0xFF800000> : vector<256xf32>
    %25 = vector.multi_reduction <maximumf>, %24, %cst_16 [0] : vector<32x256xf32> to vector<256xf32>
    %26 = vector.shape_cast %25 : vector<256xf32> to vector<1x256xf32>
    %27 = vector.broadcast %26 : vector<1x256xf32> to vector<32x256xf32>
    %28 = arith.subf %24, %27 : vector<32x256xf32>
    %29 = math.exp %28 : vector<32x256xf32>
    %cst_17 = arith.constant dense<0.000000e+00> : vector<256xf32>
    %30 = vector.multi_reduction <add>, %29, %cst_17 [0] : vector<32x256xf32> to vector<256xf32>
    %31 = vector.shape_cast %30 : vector<256xf32> to vector<1x256xf32>
    %32 = tpu.reciprocal %31 : vector<1x256xf32> -> vector<1x256xf32>
    %33 = vector.broadcast %32 : vector<1x256xf32> to vector<32x256xf32>
    %34 = arith.mulf %29, %33 : vector<32x256xf32>
    %c0_18 = arith.constant 0 : index
    %c0_19 = arith.constant 0 : index
    %c0_20 = arith.constant 0 : index
    %35 = vector.load %arg8[%c0_18, %c0_19, %c0_20] : memref<1x32x4xf32, #tpu.memory_space<vmem>>, vector<1x32x4xf32>
    %36 = vector.shape_cast %35 : vector<1x32x4xf32> to vector<32x4xf32>
    %cst_21 = arith.constant dense<0.000000e+00> : vector<32x4xf32>
    %37 = tpu.matmul %34, %11, %cst_21 {dimension_numbers = #tpu.dot_dimension_numbers<[1], [1], [0], [0], [0, 0, 1, 0], [], []>} : vector<32x256xf32>, vector<4x256xf32>, vector<32x4xf32> -> vector<32x4xf32>
    %38 = arith.addf %36, %37 : vector<32x4xf32>
    %c0_22 = arith.constant 0 : index
    %c0_23 = arith.constant 0 : index
    %c0_24 = arith.constant 0 : index
    %39 = vector.load %arg8[%c0_22, %c0_23, %c0_24] : memref<1x32x4xf32, #tpu.memory_space<vmem>>, vector<1x32x4xf32>
    %40 = vector.shape_cast %39 : vector<1x32x4xf32> to vector<32x4xf32>
    %41 = vector.shape_cast %38 : vector<32x4xf32> to vector<1x32x4xf32>
    tpu.vector_store %arg8[%c0_22, %c0_23, %c0_24], %41 {strides = array<i32>} : memref<1x32x4xf32, #tpu.memory_space<vmem>>, vector<1x32x4xf32>,
    %c0_25 = arith.constant 0 : index
    %c0_26 = arith.constant 0 : index
    %c0_27 = arith.constant 0 : index
    %42 = vector.load %arg9[%c0_25, %c0_26, %c0_27] : memref<1x32x1xf32, #tpu.memory_space<vmem>>, vector<1x32x1xf32>
    %43 = vector.shape_cast %42 : vector<1x32x1xf32> to vector<32x1xf32>
    %cst_28 = arith.constant dense<0.000000e+00> : vector<32xf32>
    %44 = vector.multi_reduction <add>, %34, %cst_28 [1] : vector<32x256xf32> to vector<32xf32>
    %45 = vector.shape_cast %44 : vector<32xf32> to vector<32x1xf32>
    %46 = arith.addf %43, %45 : vector<32x1xf32>
    %c0_29 = arith.constant 0 : index
    %c0_30 = arith.constant 0 : index
    %c0_31 = arith.constant 0 : index
    %47 = vector.load %arg9[%c0_29, %c0_30, %c0_31] : memref<1x32x1xf32, #tpu.memory_space<vmem>>, vector<1x32x1xf32>
    %48 = vector.shape_cast %47 : vector<1x32x1xf32> to vector<32x1xf32>
    %49 = vector.shape_cast %46 : vector<32x1xf32> to vector<1x32x1xf32>
    tpu.vector_store %arg9[%c0_29, %c0_30, %c0_31], %49 {strides = array<i32>} : memref<1x32x1xf32, #tpu.memory_space<vmem>>, vector<1x32x1xf32>,
    return
  }
  func.func @transform_0(%arg0: i32, %arg1: i32) -> (i32, i32, i32) {
    %c0_i32 = arith.constant 0 : i32
    %c0_i32_0 = arith.constant 0 : i32
    return %arg0, %c0_i32, %arg1 : i32, i32, i32
  }
  func.func @transform_1(%arg0: i32, %arg1: i32) -> (i32, i32) {
    %c0_i32 = arith.constant 0 : i32
    %c0_i32_0 = arith.constant 0 : i32
    %c0_i32_1 = arith.constant 0 : i32
    return %c0_i32, %c0_i32_0 : i32, i32
  }
  func.func @transform_2(%arg0: i32, %arg1: i32) -> (i32, i32) {
    %c0_i32 = arith.constant 0 : i32
    %c0_i32_0 = arith.constant 0 : i32
    %c0_i32_1 = arith.constant 0 : i32
    return %c0_i32, %c0_i32_0 : i32, i32
  }
  func.func @transform_3(%arg0: i32, %arg1: i32) -> (i32, i32) {
    %c0_i32 = arith.constant 0 : i32
    %c0_i32_0 = arith.constant 0 : i32
    %c0_i32_1 = arith.constant 0 : i32
    return %c0_i32, %c0_i32_0 : i32, i32
  }
  func.func @transform_4(%arg0: i32, %arg1: i32) -> (i32, i32) {
    %c0_i32 = arith.constant 0 : i32
    %c0_i32_0 = arith.constant 0 : i32
    %c0_i32_1 = arith.constant 0 : i32
    return %c0_i32, %c0_i32_0 : i32, i32
  }
  func.func @transform_5(%arg0: i32, %arg1: i32) -> (i32, i32) {
    %c0_i32 = arith.constant 0 : i32
    %c0_i32_0 = arith.constant 0 : i32
    %c0_i32_1 = arith.constant 0 : i32
    return %c0_i32, %c0_i32_0 : i32, i32
  }
  func.func @transform_6(%arg0: i32, %arg1: i32) -> (i32, i32, i32) {
    %c0_i32 = arith.constant 0 : i32
    %c0_i32_0 = arith.constant 0 : i32
    %c0_i32_1 = arith.constant 0 : i32
    return %arg0, %c0_i32, %c0_i32_0 : i32, i32, i32
  }
  func.func @transform_7(%arg0: i32, %arg1: i32) -> (i32, i32, i32) {
    %c0_i32 = arith.constant 0 : i32
    %c0_i32_0 = arith.constant 0 : i32
    %c0_i32_1 = arith.constant 0 : i32
    return %arg0, %c0_i32, %c0_i32_0 : i32, i32, i32
  }
}

module attributes {stable_mosaic.version = 11 : i64} {
  func.func @modulate_kernel(%arg0: i32, %arg1: i32, %arg2: memref<1x4x256xf32, #tpu.memory_space<vmem>>, %arg3: memref<1x4x1xf32, #tpu.memory_space<vmem>>, %arg4: memref<1x4x256xf32, #tpu.memory_space<vmem>>) attributes {dimension_semantics = [#tpu.dimension_semantics<parallel>, #tpu.dimension_semantics<parallel>], iteration_bounds = array<i64: 2, 1>, scalar_prefetch = 0 : i64, scratch_operands = 0 : i64, tpu.core_type = #tpu.core_type<tc>, window_params = [{transform_indices = @transform_0, window_bounds = array<i64: 1, 4, 256>}, {transform_indices = @transform_1, window_bounds = array<i64: 1, 4, 1>}, {transform_indices = @transform_2, window_bounds = array<i64: 1, 4, 256>}]} {
    %c0 = arith.constant 0 : index
    %c0_0 = arith.constant 0 : index
    %c0_1 = arith.constant 0 : index
    %0 = vector.load %arg2[%c0, %c0_0, %c0_1] : memref<1x4x256xf32, #tpu.memory_space<vmem>>, vector<1x4x256xf32>
    %1 = vector.shape_cast %0 : vector<1x4x256xf32> to vector<4x256xf32>
    %c0_2 = arith.constant 0 : index
    %c0_3 = arith.constant 0 : index
    %c0_4 = arith.constant 0 : index
    %2 = vector.load %arg3[%c0_2, %c0_3, %c0_4] : memref<1x4x1xf32, #tpu.memory_space<vmem>>, vector<1x4x1xf32>
    %3 = vector.shape_cast %2 : vector<1x4x1xf32> to vector<4x1xf32>
    %4 = vector.broadcast %3 : vector<4x1xf32> to vector<4x256xf32>
    %5 = arith.mulf %1, %4 : vector<4x256xf32>
    %cst = arith.constant 0.000000e+00 : f32
    %6 = vector.broadcast %cst : f32 to vector<4x256xf32>
    %7 = arith.maximumf %5, %6 : vector<4x256xf32>
    %c0_5 = arith.constant 0 : index
    %c0_6 = arith.constant 0 : index
    %c0_7 = arith.constant 0 : index
    %8 = vector.load %arg4[%c0_5, %c0_6, %c0_7] : memref<1x4x256xf32, #tpu.memory_space<vmem>>, vector<1x4x256xf32>
    %9 = vector.shape_cast %8 : vector<1x4x256xf32> to vector<4x256xf32>
    %10 = vector.shape_cast %7 : vector<4x256xf32> to vector<1x4x256xf32>
    tpu.vector_store %arg4[%c0_5, %c0_6, %c0_7], %10 {strides = array<i32>} : memref<1x4x256xf32, #tpu.memory_space<vmem>>, vector<1x4x256xf32>,
    return
  }
  func.func @transform_0(%arg0: i32, %arg1: i32) -> (i32, i32, i32) {
    %c0_i32 = arith.constant 0 : i32
    %c0_i32_0 = arith.constant 0 : i32
    return %arg0, %c0_i32, %arg1 : i32, i32, i32
  }
  func.func @transform_1(%arg0: i32, %arg1: i32) -> (i32, i32, i32) {
    %c0_i32 = arith.constant 0 : i32
    %c0_i32_0 = arith.constant 0 : i32
    %c0_i32_1 = arith.constant 0 : i32
    return %arg0, %c0_i32, %c0_i32_0 : i32, i32, i32
  }
  func.func @transform_2(%arg0: i32, %arg1: i32) -> (i32, i32, i32) {
    %c0_i32 = arith.constant 0 : i32
    %c0_i32_0 = arith.constant 0 : i32
    return %arg0, %c0_i32, %arg1 : i32, i32, i32
  }
}

</mosaic_0001>

<bundles_post_ra>
// kernel: enc_module_forward.3
= control target key start
LH: loop header
LB: loop body
LE: loop exit
PB: predicated region body
PF: predicated region fallthrough
CT: control target
= control target key end

     0   :  { %9 = vsyncpa [#allocation3], 0  ;;  %s1041_s0 = inlined_call_operand.hbm [shape: f32[2,4,256], index: 0, kind: input, shape index: {}]   ;;  %s1042_s1 = inlined_call_operand.hbm [shape: f32[4,4], index: 1, kind: input, shape index: {}]   ;;  %s1043_s2 = inlined_call_operand.hbm [shape: f32[2,4,128], index: 2, kind: output, shape index: {0}]   ;;  %s1044_s3 = inlined_call_operand.hbm [shape: f32[2,4,128], index: 3, kind: output, shape index: {1}]  }
   0x1   :  { %11 = vsyncpa [#allocation3 + $0x1], 0 }
   0x2   :  { %12 = vsyncpa [#allocation6], 0 }
   0x3   :  { %13 = vsyncpa [#allocation4], 0 }
   0x4   :  { %15 = vsyncpa [#allocation4 + $0x1], 0 }
   0x5   :  { %16 = vsyncpa [#allocation9], 0 }
   0x6   :  { %18 = vsyncpa [#allocation9 + $0x1], 0  ;;  %s789_s12 = smov 0   ;;  %s791_s13 = smov 0  }
   0x7   :  { %s793_s14 = smov 0   ;;  %s795_s15 = smov 0  }
   0x8   :  { %s797_s16 = smov 0   ;;  %s799_s17 = smov 0  }
   0x9 LB: > { %s483_s18 = sadd.s32 4294967295, %s762_s17   ;;  %s484_s19 = sadd.s32 4294967294, %s762_s17   ;;  %s762_s17 = sphi %s799_s17, %s24_s17   ;;  %s758_s16 = sphi %s797_s16, %s1069_s16   ;;  %s754_s15 = sphi %s795_s15, %s1068_s15   ;;  %s750_s14 = sphi %s793_s14, %s1067_s14   ;;  %s746_s13 = sphi %s791_s13, %s1066_s13   ;;  %s742_s12 = sphi %s789_s12, %s1065_s12  }
   0xa   : > { %p58_p0 = scmp.ne.s32.totalorder %s746_s13, %s742_s12  ;;  %p823_p1 = scmp.eq.s32.totalorder %s483_s18, 0 }
   0xb   : > { %p827_p2 = scmp.eq.s32.totalorder %s483_s18, 1  ;;  %p109_p3 = scmp.eq.s32.totalorder %s484_s19, 1 }
   0xc   : > { %s1049_s20 = scalar_select %p823_p1, 1, 0 }
   0xd   : > { %s1050_s21 = scalar_select %p827_p2, 1, 0 }
   0xe   : > { %p833_p4 = por %p823_p1, %p58_p0  ;;  %p485_p5 = scmp.ge.s32.totalorder %s762_s17, 1 }
   0xf   : > { %p838_p6 = por %p109_p3, %p58_p0  ;;  %p142_p7 = scmp.lt.s32.totalorder %s762_s17, 3 }
  0x10   : > { %s1051_s22 = scalar_select %p833_p4, 1, 0 }
  0x11   : > { %s1052_s23 = scalar_select %p838_p6, 1, 0 }
  0x12   : > { %p843_p8 = pnand %p485_p5, %p142_p7  ;;  %s764_s25 = smov [#allocation5]  }
  0x13   : > { %s155_s26 = sshll.u32 %s764_s25, 4  ;;  %s36_s28 = sadd.s32 1, %s758_s16  ;;  %s156_s26 = int_to_ptr.vmem [resolvable:$true] %s155_s26 }
  0x14   : > { %s1053_s24 = scalar_select %p843_p8, 1, 0 }
  0x15   : > { %p516_p10 = pneg %p843_p8  ;;  %s45_s29 = sadd.s32 1, %s750_s14 }
  0x16   : > { %p858_p12 = scmp.ge.s32.totalorder %s36_s28, 2  ;;  %s586_s6 = scalar_lea.hbm %s1042_s1, 64 }
  0x17   : > { %p852_p11 = pnand %p516_p10, %p823_p1  ;;  %p587_p13 = scmp.ne.s32.totalorder %s1042_s1, %s586_s6 }
  0x18   : > { %s1055_s30 = scalar_select %p858_p12, 1, 0 }
  0x19   : > { %p588_p0 = pneg %p852_p11  ;;  %p593_p7 = scmp.lt.u32.totalorder %s586_s6, %s1042_s1 }
  0x1b   : > { %p589_p3 = pnand %p588_p0, %p587_p13 }
  0x1d   : > { %p590_p5 = pneg %p589_p3 }
  0x1f   : > { %p595_p10 = pnand %p593_p7, %p590_p5 }
  0x21   : > { %598 = shalt.err (!%p595_p10)
}
  0x22   : > { %s599_s11 = scalar_lea.vmem %s156_s26, 64  ;;  %p607_p4 = scmp.lt.s32.totalorder %s156_s26, %s156_s26 }
  0x23   : > { %p600_p9 = scmp.ne.s32.totalorder %s156_s26, %s599_s11  ;;  %p608_p8 = scmp.lt.s32.totalorder %s599_s11, %s599_s11 }
  0x25   : > { %p602_p6 = pnand %p600_p9, %p588_p0  ;;  %p609_p2 = por %p608_p8, %p607_p4 }
  0x27   : > { %p603_p1 = pneg %p602_p6 }
  0x29   : > { %p610_p12 = pnand %p609_p2, %p603_p1 }
  0x2b   : > { %613 = shalt.err (!%p610_p12)
}
  0x2c   : > { %519 = dma.hbm_to_vmem [thread:$0]  (!%p852_p11), %s1042_s1, 64, %s156_s26, [#allocation6]  }
  0x2d   : > { %p1056_p4 = scmp.ne.s32.totalorder %s1055_s30, 0  ;;  %p52_p1 = scmp.ne.s32.totalorder %s750_s14, %s746_s13 }
  0x2e   : > { %p53_p2 = scmp.eq.s32.totalorder %s762_s17, 0  ;;  %p532_p6 = scmp.lt.s32.totalorder %s762_s17, 2 }
  0x2f   : > { %s1071_s28 = smov (%p1056_p4, %s36_s28), 0  ;;  %p1057_p12 = scmp.ne.s32.totalorder %s1050_s21, 0 }
  0x30   : > { %s40_s25 = ssub.s32 %s758_s16, %s1071_s28  ;;  %p54_p9 = por %p53_p2, %p52_p1 }
  0x31   : > { %p43_p8 = scmp.eq.s32.totalorder %s40_s25, 0  ;;  %p890_p13 = por %p1057_p12, %p52_p1 }
  0x32   : > { %s166_s4 = sand.u32 1, %s750_s14   ;;  %s505_s30 = sshll.u32 %s758_s16, 7 }
  0x33   : > { %s898_s5 = scalar_select %p43_p8, %s750_s14, %s45_s29  }
  0x34   : > { %s488_s26 = sshll.u32 %s166_s4, 3  ;;  %s904_s8 = scalar_lea.hbm %s1041_s0, %s505_s30 }
  0x35   : > { %s170_s21 = scalar_lea.vmem [#allocation2], %s488_s26  ;;  %p908_p11 = pnand %p532_p6, %p54_p9 }
  0x36   : > { %s180_s9 = sshll.u32 %s170_s21, 4  ;;  %s167_s29 = scalar_lea.sflag [#allocation3], %s166_s4  ;;  %s906_s9 = int_to_ptr.vmem [resolvable:$true] %s180_s9 }
  0x37   : > { %s614_s11 = scalar_lea.hbm %s904_s8, 128  ;;  %p616_p3 = pneg %p908_p11 }
  0x38   : > { %p615_p0 = scmp.ne.s32.totalorder %s904_s8, %s614_s11  ;;  %s619_s25 = scalar_lea.hbm %s1041_s0, 256 }
  0x39   : > { %p620_p10 = scmp.lt.u32.totalorder %s904_s8, %s1041_s0  ;;  %p621_p4 = scmp.lt.u32.totalorder %s619_s25, %s614_s11 }
  0x3a   : > { %p617_p5 = pnand %p616_p3, %p615_p0  ;;  %p623_p2 = scmp.lt.u32.totalorder %s614_s11, %s904_s8 }
  0x3b   : > { %p622_p1 = por %p621_p4, %p620_p10 }
  0x3c   : > { %p618_p7 = pneg %p617_p5 }
  0x3d   : > { %p624_p6 = por %p623_p2, %p622_p1 }
  0x3f   : > { %p625_p8 = pnand %p624_p6, %p618_p7 }
  0x41   : > { %628 = shalt.err (!%p625_p8)
}
  0x42   : > { %s629_s4 = scalar_lea.vmem %s906_s9, 128  ;;  %s765_s6 = smov [#allocation2]  }
  0x43   : > { %p630_p9 = scmp.ne.s32.totalorder %s906_s9, %s629_s4  ;;  %s634_s7 = sshll.u32 %s765_s6, 4  ;;  %s635_s7 = int_to_ptr.vmem [resolvable:$false] %s634_s7 }
  0x44   : > { %s636_s21 = scalar_lea.vmem %s635_s7, 256  ;;  %p637_p5 = scmp.lt.s32.totalorder %s906_s9, %s635_s7 }
  0x45   : > { %p632_p12 = pnand %p630_p9, %p616_p3  ;;  %p638_p10 = scmp.lt.s32.totalorder %s636_s21, %s629_s4 }
  0x47   : > { %p633_p0 = pneg %p632_p12  ;;  %p639_p4 = por %p638_p10, %p637_p5 }
  0x49   : > { %p640_p1 = pnand %p639_p4, %p633_p0 }
  0x4b   : > { %643 = shalt.err (!%p640_p1)
}
  0x4c   : > { %523 = dma.hbm_to_vmem [thread:$0]  (!%p908_p11), %s904_s8, 128, %s906_s9, %s167_s29  }
  0x4d   : > { %p1060_p7 = scmp.ne.s32.totalorder %s1053_s24, 0 }
  0x4e   : > { %s940_s11 = sand.u32 (!%p1060_p7), 1, %s746_s13   ;;  %p1061_p3 = scmp.ne.s32.totalorder (!%p1060_p7), %s1051_s22, 0 }
  0x4f   : > { %189 = sbr.rel (%p1060_p7) target bundleno = 348 (0x15c), region = 28  ;;  %s492_s18 = sshll.u32 (!%p1060_p7), %s940_s11, 3 }
  0x50   : > { %s192_s19 = scalar_lea.sflag (!%p1060_p7), [#allocation3], %s940_s11  ;;  %s195_s25 = scalar_lea.vmem (!%p1060_p7), [#allocation2], %s492_s18 }
  0x56   : > { %725 = dma.done.wait (%p1061_p3), %s192_s19, 128  }
  0x57   : > { %727 = vsyncadd (%p1061_p3), %s192_s19, 4294967168  ;;  %p1062_p2 = scmp.ne.s32.totalorder %s1049_s20, 0 }
  0x59   : > { %729 = dma.done.wait (%p1062_p2), [#allocation6], 64  }
  0x5a   : > { %731 = vsyncadd (%p1062_p2), [#allocation6], 4294967232  ;;  %s494_s24 = sshll.u32 %s940_s11, 2  ;;  %v766_v0 = vmov 0.0   ;;  %v235_v1 = vld [vmem:[%s195_s25] sm:$0xff]  ;;  %vm242_vm0 = vcmask 1043456  }
  0x5b   : > { %311 = vmatprep.mubr.f32.mxu0 %v766_v0  ;;  %s219_s8 = scalar_lea.vmem [#allocation7], %s494_s24  ;;  %s953_s9 = scalar_lea.vmem [#allocation8], %s494_s24  ;;  %v237_v2 = vcombine.high %v235_v1, %v235_v1  ;;  %v234_v3 = vld [vmem:[#allocation5] sm:$0xf]  ;;  %vm238_vm1 = vcmask 31744  }
  0x5c   : > { %232 = vst [vmem:[%s219_s8] sm:$0xf] %v766_v0  ;;  %233 = vst [vmem:[%s953_s9] sm:$0xf] %v766_v0  ;;  %s501_s20 = sshll.u32 %s754_s15, 6  ;;  %s347_s22 = sshll.u32 %s219_s8, 4  ;;  %s964_s22 = int_to_ptr.vmem [resolvable:$true] %s347_s22 }
  0x5d   : > { %496 = vmatprep.subr.msk.mxu0 %vm242_vm0, %v237_v2  ;;  %s360_s10 = sshll.u32 %s953_s9, 4  ;;  %s962_s30 = scalar_lea.hbm %s1043_s2, %s501_s20  ;;  %s971_s10 = int_to_ptr.vmem [resolvable:$true] %s360_s10 }
  0x5e   : > { %497 = vmatpush1.msk.msra.mxu0 %vm242_vm0, %v235_v1  ;;  %s969_s6 = scalar_lea.hbm %s1044_s3, %s501_s20  ;;  %s329_s7 = scalar_lea.sflag [#allocation4], %s940_s11 }
  0x5f   : > { %498 = vmatmul.mubr.msk.f32.vlgmr.msra.gmra.mrb[0].mxu0 %vm238_vm1, %v234_v3  ;;  %s644_s21 = scalar_lea.vmem %s964_s22, 64  ;;  %s767_s18 = smov [#allocation7]  }
  0x60   : > { %p645_p11 = scmp.ne.s32.totalorder %s964_s22, %s644_s21  ;;  %s648_s19 = sshll.u32 %s767_s18, 4  ;;  %s649_s19 = int_to_ptr.vmem [resolvable:$false] %s648_s19 }
  0x61   : > { %s650_s25 = scalar_lea.vmem %s649_s19, 128  ;;  %p651_p9 = scmp.lt.s32.totalorder %s964_s22, %s649_s19 }
  0x62   : > { %p646_p6 = pnand %p645_p11, %p890_p13  ;;  %p652_p12 = scmp.lt.s32.totalorder %s650_s25, %s644_s21 }
  0x63   : > { %v320_v4 = vld [vmem:[%s219_s8] sm:$0xf]  ;;  %v321_v6 = vld [vmem:[%s953_s9] sm:$0xf] }
  0x64   : > { %p647_p8 = pneg %p646_p6  ;;  %p653_p0 = por %p652_p12, %p651_p9 }
  0x66   : > { %p654_p5 = pnand %p653_p0, %p647_p8 }
 0x132   : > { %v313_v5 = vpop.f32.mrb[0].mxu0 }
 0x133   : > { %v318_v7 = vmul.f32 %v313_v5, %v313_v5  ;;  %v322_v8 = vadd.f32 %v320_v4, %v313_v5  ;;  %v315_v9 = vpop.f32.mrb[1].mxu0 }
 0x134   : > { %v319_v10 = vmul.f32 %v315_v9, %v315_v9 }
 0x135   : > { %v323_v11 = vadd.f32 %v321_v6, %v318_v7  ;;  %v324_v12 = vadd.f32 %v322_v8, %v315_v9 }
 0x137   : > { %v325_v13 = vadd.f32 %v323_v11, %v319_v10  ;;  %326 = vst [vmem:[%s219_s8] sm:$0xf] %v324_v12 }
 0x138   : > { %657 = shalt.err (!%p654_p5)
}
 0x139   : > { %s658_s24 = scalar_lea.hbm %s962_s30, 64  ;;  %s662_s29 = scalar_lea.hbm %s1043_s2, 128 }
 0x13a   : > { %p659_p10 = scmp.ne.s32.totalorder %s962_s30, %s658_s24  ;;  %p663_p7 = scmp.lt.u32.totalorder %s962_s30, %s1043_s2 }
 0x13b   : > { %p664_p3 = scmp.lt.u32.totalorder %s662_s29, %s658_s24  ;;  %p666_p11 = scmp.lt.u32.totalorder %s658_s24, %s962_s30 }
 0x13c   : > { %p660_p4 = pnand %p659_p10, %p890_p13 }
 0x13d   : > { %p665_p2 = por %p664_p3, %p663_p7 }
 0x13e   : > { %p661_p1 = pneg %p660_p4 }
 0x13f   : > { %p667_p6 = por %p666_p11, %p665_p2 }
 0x141   : > { %p668_p8 = pnand %p667_p6, %p661_p1 }
 0x143   : > { %671 = shalt.err (!%p668_p8)
}
 0x144   : > { %512 = dma.vmem_to_hbm [thread:$0]  (%p890_p13), %s964_s22, 64, %s962_s30, %s329_s7   ;;  %327 = vst [vmem:[%s953_s9] sm:$0xf] %v325_v13 }
 0x145   : > { %s334_s4 = scalar_lea.sflag [#allocation9], %s940_s11  ;;  %s672_s21 = scalar_lea.vmem %s971_s10, 64 }
 0x146   : > { %p673_p9 = scmp.ne.s32.totalorder %s971_s10, %s672_s21  ;;  %s768_s18 = smov [#allocation8]  }
 0x147   : > { %s676_s19 = sshll.u32 %s768_s18, 4  ;;  %s677_s19 = int_to_ptr.vmem [resolvable:$false] %s676_s19 }
 0x148   : > { %p674_p12 = pnand %p673_p9, %p890_p13  ;;  %s678_s25 = scalar_lea.vmem %s677_s19, 128 }
 0x149   : > { %p679_p5 = scmp.lt.s32.totalorder %s971_s10, %s677_s19  ;;  %p680_p10 = scmp.lt.s32.totalorder %s678_s25, %s672_s21 }
 0x14a   : > { %p675_p0 = pneg %p674_p12 }
 0x14b   : > { %p681_p4 = por %p680_p10, %p679_p5 }
 0x14d   : > { %p682_p1 = pnand %p681_p4, %p675_p0 }
 0x14f   : > { %685 = shalt.err (!%p682_p1)
}
 0x150   : > { %s686_s11 = scalar_lea.hbm %s969_s6, 64  ;;  %s690_s30 = scalar_lea.hbm %s1044_s3, 128 }
 0x151   : > { %p687_p7 = scmp.ne.s32.totalorder %s969_s6, %s686_s11  ;;  %p691_p11 = scmp.lt.u32.totalorder %s969_s6, %s1044_s3 }
 0x152   : > { %p692_p6 = scmp.lt.u32.totalorder %s690_s30, %s686_s11  ;;  %p694_p9 = scmp.lt.u32.totalorder %s686_s11, %s969_s6 }
 0x153   : > { %p688_p3 = pnand %p687_p7, %p890_p13 }
 0x154   : > { %p693_p8 = por %p692_p6, %p691_p11 }
 0x155   : > { %p689_p2 = pneg %p688_p3 }
 0x156   : > { %p695_p12 = por %p694_p9, %p693_p8 }
 0x158   : > { %p696_p0 = pnand %p695_p12, %p689_p2 }
 0x15a   : > { %699 = shalt.err (!%p696_p0)
}
 0x15b   : > { %513 = dma.vmem_to_hbm [thread:$0]  (%p890_p13), %s971_s10, 64, %s969_s6, %s334_s4  }
 0x15c PF: > { %s372_s8 = sand.u32 1, %s742_s12   ;;  %p1063_p5 = scmp.ne.s32.totalorder %s1052_s23, 0 }
 0x15d   : > { %p1064_p10 = scmp.ge.s32.totalorder %s762_s17, 2  ;;  %s373_s20 = scalar_lea.sflag [#allocation4], %s372_s8 }
 0x15f   : > { %p525_p4 = pnand %p1064_p10, %p1063_p5 }
 0x161   : > { %733 = dma.done.wait (!%p525_p4), %s373_s20, 64  }
 0x162   : > { %735 = vsyncadd (!%p525_p4), %s373_s20, 4294967232  ;;  %s382_s29 = scalar_lea.sflag [#allocation9], %s372_s8 }
 0x163   : > { %737 = dma.done.wait (!%p525_p4), %s382_s29, 64  }
 0x164   : > { %739 = vsyncadd (!%p525_p4), %s382_s29, 4294967232  ;;  %s24_s17 = sadd.s32 1, %s762_s17   ;;  %s1065_s12 = smov %s746_s13 }
 0x165   : > { %p21_p1 = scmp.ge.s32.totalorder %s24_s17, 4   ;;  %s1066_s13 = smov %s750_s14 }
 0x166   : > { %s1067_s14 = smov %s898_s5  ;;  %s1068_s15 = smov %s758_s16 }
 0x167   : > { %s1069_s16 = smov %s1071_s28  ;;  %23 = sbr.rel (!%p21_p1) target bundleno = 9 (0x9), region = 98 }
 0x16e   :  { %387 = vsyncpa [#allocation3], 1 }
 0x16f   :  { %389 = vsyncpa [#allocation3 + $0x1], 1 }
 0x170   :  { %390 = vsyncpa [#allocation6], 1 }
 0x171   :  { %391 = vsyncpa [#allocation4], 1 }
 0x172   :  { %393 = vsyncpa [#allocation4 + $0x1], 1 }
 0x173   :  { %394 = vsyncpa [#allocation9], 1 }
 0x174   :  { %396 = vsyncpa [#allocation9 + $0x1], 1 }

// kernel: enc_module_forward.4
= control target key start
LH: loop header
LB: loop body
LE: loop exit
PB: predicated region body
PF: predicated region fallthrough
CT: control target
= control target key end

     0   :  { %s2065_s0 = inlined_call_operand.hbm [shape: f32[2,4,256], index: 0, kind: input, shape index: {}]   ;;  %s2066_s1 = inlined_call_operand.hbm [shape: f32[4,4], index: 1, kind: input, shape index: {}]   ;;  %s2067_s2 = inlined_call_operand.hbm [shape: f32[4,1], index: 2, kind: input, shape index: {}]   ;;  %s2068_s3 = inlined_call_operand.hbm [shape: f32[32,4], index: 3, kind: input, shape index: {}]   ;;  %s2069_s4 = inlined_call_operand.hbm [shape: f32[32,1], index: 4, kind: input, shape index: {}]   ;;  %s2070_s5 = inlined_call_operand.hbm [shape: f32[32,1], index: 5, kind: input, shape index: {}]   ;;  %s2071_s6 = inlined_call_operand.hbm [shape: f32[2,32,4], index: 6, kind: output, shape index: {0}]   ;;  %s2072_s7 = inlined_call_operand.hbm [shape: f32[2,32,1], index: 7, kind: output, shape index: {1}]  }
   0x1   :  { %2082 = sst [smem:[#allocation22_spill]] %s2066_s1 }
   0x2   :  { %2083 = sst [smem:[#allocation23_spill]] %s2067_s2 }
   0x3   :  { %13 = vsyncpa [#allocation3], 0 }
   0x4   :  { %15 = vsyncpa [#allocation3 + $0x1], 0 }
   0x5   :  { %16 = vsyncpa [#allocation6], 0 }
   0x6   :  { %17 = vsyncpa [#allocation9], 0 }
   0x7   :  { %18 = vsyncpa [#allocation12], 0 }
   0x8   :  { %19 = vsyncpa [#allocation4], 0 }
   0x9   :  { %21 = vsyncpa [#allocation4 + $0x1], 0 }
   0xa   :  { %22 = vsyncpa [#allocation15], 0 }
   0xb   :  { %24 = vsyncpa [#allocation15 + $0x1], 0  ;;  %s1628_s24 = smov 0   ;;  %s1630_s25 = smov 0  }
   0xc   :  { %s1632_s26 = smov 0   ;;  %s1634_s27 = smov 0  }
   0xd   :  { %s1636_s28 = smov 0   ;;  %s1638_s29 = smov 0  }
   0xe LB: > { %s2076_s30 = sadd.s32 4294967295, %s1572_s29   ;;  %p1090_p0 = scmp.ge.s32.totalorder %s1572_s29, 1  ;;  %s1572_s29 = sphi %s1638_s29, %s30_s29   ;;  %s1568_s28 = sphi %s1636_s28, %s2108_s28   ;;  %s1564_s27 = sphi %s1634_s27, %s2107_s27   ;;  %s1560_s26 = sphi %s1632_s26, %s2106_s26   ;;  %s1556_s25 = sphi %s1630_s25, %s2105_s25   ;;  %s1552_s24 = sphi %s1628_s24, %s2104_s24  }
   0xf   : > { %p1662_p1 = scmp.eq.s32.totalorder %s2076_s30, 0  ;;  %p232_p2 = scmp.lt.s32.totalorder %s1572_s29, 3 }
  0x10   : > { %s1574_s10 = smov [#allocation5]   ;;  %s1575_s12 = smov [#allocation8]  }
  0x11   : > { %s2084_s8 = scalar_select %p1662_p1, 1, 0 }
  0x12   : > { %p1667_p3 = pnand %p1090_p0, %p232_p2  ;;  %s245_s11 = sshll.u32 %s1574_s10, 4  ;;  %s246_s11 = int_to_ptr.vmem [resolvable:$true] %s245_s11 }
  0x13   : > { %s266_s13 = sshll.u32 %s1575_s12, 4  ;;  %s1576_s15 = smov [#allocation7]   ;;  %s1680_s13 = int_to_ptr.vmem [resolvable:$true] %s266_s13 }
  0x14   : > { %s2085_s9 = scalar_select %p1667_p3, 1, 0 }
  0x15   : > { %p1155_p5 = pneg %p1667_p3  ;;  %s1682_s16 = sshll.u32 %s1576_s15, 4  ;;  %s257_s16 = int_to_ptr.vmem [resolvable:$true] %s1682_s16 }
  0x16   : > { %s2087_s1 = sld [smem:[#allocation22_spill]] }
  0x17   : > { %p1676_p6 = pnand %p1155_p5, %p1662_p1 }
  0x19   : > { %p1692_p8 = pneg %p1676_p6 }
  0x1c   : > { %s1276_s19 = scalar_lea.hbm %s2087_s1, 64 }
  0x1d   : > { %p1277_p7 = scmp.ne.s32.totalorder %s2087_s1, %s1276_s19  ;;  %p1283_p11 = scmp.lt.u32.totalorder %s1276_s19, %s2087_s1 }
  0x1f   : > { %p1279_p9 = pnand %p1692_p8, %p1277_p7 }
  0x21   : > { %p1280_p10 = pneg %p1279_p9 }
  0x23   : > { %p1285_p12 = pnand %p1283_p11, %p1280_p10 }
  0x25   : > { %1288 = shalt.err (!%p1285_p12)
}
  0x26   : > { %s1289_s12 = scalar_lea.vmem %s246_s11, 64  ;;  %p1297_p5 = scmp.lt.s32.totalorder %s246_s11, %s246_s11 }
  0x27   : > { %p1290_p13 = scmp.ne.s32.totalorder %s246_s11, %s1289_s12  ;;  %p1298_p4 = scmp.lt.s32.totalorder %s1289_s12, %s1289_s12 }
  0x29   : > { %p1292_p0 = pnand %p1290_p13, %p1692_p8  ;;  %p1299_p3 = por %p1298_p4, %p1297_p5 }
  0x2b   : > { %p1293_p2 = pneg %p1292_p0 }
  0x2d   : > { %p1300_p1 = pnand %p1299_p3, %p1293_p2 }
  0x2f   : > { %1303 = shalt.err (!%p1300_p1)
}
  0x30   : > { %1158 = dma.hbm_to_vmem [thread:$0]  (!%p1676_p6), %s2087_s1, 64, %s246_s11, [#allocation6]  }
  0x31   : > { %s1304_s20 = scalar_lea.hbm %s2068_s3, 512 }
  0x32   : > { %p1305_p7 = scmp.ne.s32.totalorder %s2068_s3, %s1304_s20  ;;  %p1311_p1 = scmp.lt.u32.totalorder %s1304_s20, %s2068_s3 }
  0x34   : > { %p1307_p9 = pnand %p1305_p7, %p1692_p8 }
  0x36   : > { %p1308_p4 = pneg %p1307_p9 }
  0x38   : > { %p1313_p3 = pnand %p1311_p1, %p1308_p4 }
  0x3a   : > { %1316 = shalt.err (!%p1313_p3)
}
  0x3b   : > { %s1317_s11 = scalar_lea.vmem %s1680_s13, 512  ;;  %p1325_p13 = scmp.lt.s32.totalorder %s1680_s13, %s1680_s13 }
  0x3c   : > { %p1318_p10 = scmp.ne.s32.totalorder %s1680_s13, %s1317_s11  ;;  %p1326_p0 = scmp.lt.s32.totalorder %s1317_s11, %s1317_s11 }
  0x3e   : > { %p1320_p11 = pnand %p1318_p10, %p1692_p8  ;;  %p1327_p2 = por %p1326_p0, %p1325_p13 }
  0x40   : > { %p1321_p12 = pneg %p1320_p11 }
  0x42   : > { %p1328_p5 = pnand %p1327_p2, %p1321_p12 }
  0x44   : > { %1331 = shalt.err (!%p1328_p5)
}
  0x45   : > { %s2077_s15 = smov 128   ;;  %s2079_s17 = smov 8  }
  0x46   : > { %1164 = dma.hbm_to_vmem [thread:$0]  (!%p1676_p6), %s2068_s3, 512, %s1680_s13, [#allocation9], %s2077_s15, %s2077_s15, %s2079_s17  }
  0x47   : > { %s2089_s2 = sld [smem:[#allocation23_spill]] }
  0x4d   : > { %s1332_s23 = scalar_lea.hbm %s2089_s2, 64 }
  0x4e   : > { %p1333_p7 = scmp.ne.s32.totalorder %s2089_s2, %s1332_s23  ;;  %p1339_p1 = scmp.lt.u32.totalorder %s1332_s23, %s2089_s2 }
  0x50   : > { %p1335_p9 = pnand %p1333_p7, %p1692_p8 }
  0x52   : > { %p1336_p4 = pneg %p1335_p9 }
  0x54   : > { %p1341_p3 = pnand %p1339_p1, %p1336_p4 }
  0x56   : > { %1344 = shalt.err (!%p1341_p3)
}
  0x57   : > { %s1345_s18 = scalar_lea.vmem %s257_s16, 64  ;;  %p1353_p13 = scmp.lt.s32.totalorder %s257_s16, %s257_s16 }
  0x58   : > { %p1346_p10 = scmp.ne.s32.totalorder %s257_s16, %s1345_s18  ;;  %p1354_p0 = scmp.lt.s32.totalorder %s1345_s18, %s1345_s18 }
  0x5a   : > { %p1348_p11 = pnand %p1346_p10, %p1692_p8  ;;  %p1355_p2 = por %p1354_p0, %p1353_p13 }
  0x5c   : > { %p1349_p12 = pneg %p1348_p11 }
  0x5e   : > { %p1356_p5 = pnand %p1355_p2, %p1349_p12 }
  0x60   : > { %1359 = shalt.err (!%p1356_p5)
}
  0x61   : > { %1161 = dma.hbm_to_vmem [thread:$0]  (!%p1676_p6), %s2089_s2, 64, %s257_s16, [#allocation6]  }
  0x62   : > { %s1579_s30 = smov [#allocation10]   ;;  %s1580_s21 = smov [#allocation11]  }
  0x63   : > { %s279_s20 = sshll.u32 %s1579_s30, 4  ;;  %s292_s23 = sshll.u32 %s1580_s21, 4  ;;  %s280_s20 = int_to_ptr.vmem [resolvable:$true] %s279_s20  ;;  %s293_s23 = int_to_ptr.vmem [resolvable:$true] %s292_s23 }
  0x64   : > { %s1360_s11 = scalar_lea.hbm %s2069_s4, 512 }
  0x65   : > { %p1361_p7 = scmp.ne.s32.totalorder %s2069_s4, %s1360_s11  ;;  %p1367_p1 = scmp.lt.u32.totalorder %s1360_s11, %s2069_s4 }
  0x67   : > { %p1363_p9 = pnand %p1361_p7, %p1692_p8 }
  0x69   : > { %p1364_p4 = pneg %p1363_p9 }
  0x6b   : > { %p1369_p3 = pnand %p1367_p1, %p1364_p4 }
  0x6d   : > { %1372 = shalt.err (!%p1369_p3)
}
  0x6e   : > { %s1373_s16 = scalar_lea.vmem %s280_s20, 512  ;;  %p1381_p13 = scmp.lt.s32.totalorder %s280_s20, %s280_s20 }
  0x6f   : > { %p1374_p10 = scmp.ne.s32.totalorder %s280_s20, %s1373_s16  ;;  %p1382_p0 = scmp.lt.s32.totalorder %s1373_s16, %s1373_s16 }
  0x71   : > { %p1376_p11 = pnand %p1374_p10, %p1692_p8  ;;  %p1383_p2 = por %p1382_p0, %p1381_p13 }
  0x73   : > { %p1377_p12 = pneg %p1376_p11 }
  0x75   : > { %p1384_p5 = pnand %p1383_p2, %p1377_p12 }
  0x77   : > { %1387 = shalt.err (!%p1384_p5)
}
  0x78   : > { %s2090_s15 = smov 8   ;;  %s2091_s19 = smov 128  }
  0x79   : > { %1167 = dma.hbm_to_vmem [thread:$0]  (!%p1676_p6), %s2069_s4, 512, %s280_s20, [#allocation9], %s2091_s19, %s2091_s19, %s2090_s15  }
  0x7a   : > { %s1388_s12 = scalar_lea.hbm %s2070_s5, 512 }
  0x7b   : > { %p1389_p7 = scmp.ne.s32.totalorder %s2070_s5, %s1388_s12  ;;  %p1395_p1 = scmp.lt.u32.totalorder %s1388_s12, %s2070_s5 }
  0x7d   : > { %p1391_p9 = pnand %p1389_p7, %p1692_p8 }
  0x7f   : > { %p1392_p4 = pneg %p1391_p9 }
  0x81   : > { %p1397_p3 = pnand %p1395_p1, %p1392_p4 }
  0x83   : > { %1400 = shalt.err (!%p1397_p3)
}
  0x84   : > { %s1401_s17 = scalar_lea.vmem %s293_s23, 512  ;;  %p1409_p13 = scmp.lt.s32.totalorder %s293_s23, %s293_s23 }
  0x85   : > { %p1402_p10 = scmp.ne.s32.totalorder %s293_s23, %s1401_s17  ;;  %p1410_p0 = scmp.lt.s32.totalorder %s1401_s17, %s1401_s17 }
  0x87   : > { %p1404_p11 = pnand %p1402_p10, %p1692_p8  ;;  %p1411_p2 = por %p1410_p0, %p1409_p13 }
  0x89   : > { %p1405_p12 = pneg %p1404_p11 }
  0x8b   : > { %p1412_p5 = pnand %p1411_p2, %p1405_p12 }
  0x8d   : > { %1415 = shalt.err (!%p1412_p5)
}
  0x8e   : > { %1170 = dma.hbm_to_vmem [thread:$0]  (!%p1676_p6), %s2070_s5, 512, %s293_s23, [#allocation12], %s2091_s19, %s2091_s19, %s2090_s15  }
  0x8f   : > { %s1089_s14 = sadd.s32 4294967294, %s1572_s29   ;;  %s42_s22 = sadd.s32 1, %s1568_s28 }
  0x90   : > { %s51_s21 = sadd.s32 1, %s1560_s26  ;;  %p44_p8 = scmp.ge.s32.totalorder %s42_s22, 2 }
  0x91   : > { %p58_p7 = scmp.ne.s32.totalorder %s1560_s26, %s1556_s25  ;;  %p59_p9 = scmp.eq.s32.totalorder %s1572_s29, 0 }
  0x92   : > { %p64_p4 = scmp.ne.s32.totalorder %s1556_s25, %s1552_s24  ;;  %s2110_s22 = smov (%p44_p8, %s42_s22), 0 }
  0x93   : > { %p1805_p1 = por %p59_p9, %p58_p7  ;;  %p2093_p3 = scmp.ne.s32.totalorder %s2084_s8, 0 }
  0x94   : > { %s46_s15 = ssub.s32 %s1568_s28, %s2110_s22  ;;  %s2095_s19 = sadd.s32 4294967295, %s1572_s29  }
  0x95   : > { %p1811_p6 = por %p2093_p3, %p64_p4  ;;  %p193_p10 = scmp.eq.s32.totalorder %s2095_s19, 1 }
  0x96   : > { %p49_p11 = scmp.eq.s32.totalorder %s46_s15, 0  ;;  %p199_p12 = scmp.eq.s32.totalorder %s1089_s14, 1 }
  0x97   : > { %p1819_p13 = por %p193_p10, %p58_p7  ;;  %p1187_p0 = scmp.lt.s32.totalorder %s1572_s29, 2 }
  0x98   : > { %s1825_s11 = scalar_select %p49_p11, %s1560_s26, %s51_s21  }
  0x99   : > { %s2096_s12 = scalar_select %p1819_p13, 1, 0 }
  0x9a   : > { %p1827_p2 = por %p199_p12, %p64_p4  ;;  %s306_s13 = sand.u32 1, %s1560_s26  }
  0x9b   : > { %s1097_s16 = sshll.u32 %s306_s13, 3  ;;  %s1126_s17 = sshll.u32 %s1568_s28, 7 }
  0x9c   : > { %s2097_s18 = scalar_select %p1827_p2, 1, 0 }
  0x9d   : > { %s1836_s19 = scalar_lea.hbm %s2065_s0, %s1126_s17  ;;  %s310_s14 = scalar_lea.vmem [#allocation2], %s1097_s16 }
  0x9e   : > { %s320_s15 = sshll.u32 %s310_s14, 4  ;;  %p1842_p5 = pnand %p1187_p0, %p1805_p1  ;;  %s1838_s15 = int_to_ptr.vmem [resolvable:$true] %s320_s15 }
  0x9f   : > { %s307_s1 = scalar_lea.sflag [#allocation3], %s306_s13  ;;  %s1416_s2 = scalar_lea.hbm %s1836_s19, 128 }
  0xa0   : > { %p1417_p8 = scmp.ne.s32.totalorder %s1836_s19, %s1416_s2  ;;  %p1418_p7 = pneg %p1842_p5 }
  0xa1   : > { %s1421_s20 = scalar_lea.hbm %s2065_s0, 256  ;;  %p1422_p1 = scmp.lt.u32.totalorder %s1836_s19, %s2065_s0 }
  0xa2   : > { %p1419_p9 = pnand %p1418_p7, %p1417_p8  ;;  %p1423_p3 = scmp.lt.u32.totalorder %s1421_s20, %s1416_s2 }
  0xa3   : > { %p1425_p11 = scmp.lt.u32.totalorder %s1416_s2, %s1836_s19 }
  0xa4   : > { %p1420_p4 = pneg %p1419_p9  ;;  %p1424_p10 = por %p1423_p3, %p1422_p1 }
  0xa6   : > { %p1426_p12 = por %p1425_p11, %p1424_p10 }
  0xa8   : > { %p1427_p0 = pnand %p1426_p12, %p1420_p4 }
  0xaa   : > { %1430 = shalt.err (!%p1427_p0)
}
  0xab   : > { %s1431_s13 = scalar_lea.vmem %s1838_s15, 128  ;;  %s1581_s14 = smov [#allocation2]  }
  0xac   : > { %p1432_p8 = scmp.ne.s32.totalorder %s1838_s15, %s1431_s13  ;;  %s1436_s16 = sshll.u32 %s1581_s14, 4  ;;  %s1437_s16 = int_to_ptr.vmem [resolvable:$false] %s1436_s16 }
  0xad   : > { %s1438_s17 = scalar_lea.vmem %s1437_s16, 256  ;;  %p1439_p13 = scmp.lt.s32.totalorder %s1838_s15, %s1437_s16 }
  0xae   : > { %p1434_p9 = pnand %p1432_p8, %p1418_p7  ;;  %p1440_p1 = scmp.lt.s32.totalorder %s1438_s17, %s1431_s13 }
  0xb0   : > { %p1435_p2 = pneg %p1434_p9  ;;  %p1441_p3 = por %p1440_p1, %p1439_p13 }
  0xb2   : > { %p1442_p10 = pnand %p1441_p3, %p1435_p2 }
  0xb4   : > { %1445 = shalt.err (!%p1442_p10)
}
  0xb5   : > { %1174 = dma.hbm_to_vmem [thread:$0]  (!%p1842_p5), %s1836_s19, 128, %s1838_s15, %s307_s1  }
  0xb6   : > { %p2099_p4 = scmp.ne.s32.totalorder %s2085_s9, 0 }
  0xb7   : > { %s1874_s2 = sand.u32 (!%p2099_p4), 1, %s1556_s25  }
  0xb8   : > { %329 = sbr.rel (%p2099_p4) target bundleno = 959 (0x3bf), region = 44  ;;  %s1101_s20 = sshll.u32 (!%p2099_p4), %s1874_s2, 3 }
  0xb9   : > { %s332_s10 = scalar_lea.sflag (!%p2099_p4), [#allocation3], %s1874_s2  ;;  %s335_s30 = scalar_lea.vmem (!%p2099_p4), [#allocation2], %s1101_s20 }
  0xbf   : > { %1527 = dma.done.wait (%p1811_p6), %s332_s10, 128  }
  0xc0   : > { %1529 = vsyncadd (%p1811_p6), %s332_s10, 4294967168  ;;  %p2100_p13 = scmp.ne.s32.totalorder %s2084_s8, 0 }
  0xc2   : > { %1531 = dma.done.wait (%p2100_p13), [#allocation6], 128  }
  0xc3   : > { %1533 = vsyncadd (%p2100_p13), [#allocation6], 4294967168 }
  0xc4   : > { %1535 = dma.done.wait (%p2100_p13), [#allocation9], 1024  }
  0xc5   : > { %1537 = vsyncadd (%p2100_p13), [#allocation9], 4294966272 }
  0xc6   : > { %1539 = dma.done.wait (%p2100_p13), [#allocation12], 512  }
  0xc7   : > { %1541 = vsyncadd (%p2100_p13), [#allocation12], 4294966784  ;;  %v1582_v0 = vmov 0.0   ;;  %v1583_v1 = vmov 0   ;;  %v407_v2 = vld [vmem:[%s335_s30] sm:$0xff]  ;;  %vm420_vm0 = vcmask 1043456  }
  0xc8   : > { %489 = vmatprep.mubr.f32.mxu0 %v1582_v0  ;;  %1253 = vset.pattern.permute.xlu0 %v1583_v1  ;;  %v408_v3 = vld [vmem:[#allocation7] sm:$0xf]  ;;  %v415_v4 = vcombine.high %v407_v2, %v407_v2  ;;  %vm396_vm1 = vcmask 31744   ;;  %v406_v5 = vld [vmem:[#allocation5] sm:$0xf]  ;;  %v625_v6 = vld [vmem:[#allocation10] sm:$0xff] }
  0xc9   : > { %1254 = vset.pattern.permute.xlu1 %v1583_v1  ;;  %600 = vmatprep.mubr.f32.mxu1 %v1582_v0  ;;  %v626_v7 = vld [vmem:[#allocation10 + $0x8] sm:$0xff]  ;;  %v627_v8 = vld [vmem:[#allocation10 + $0x10] sm:$0xff]  ;;  %v628_v9 = vld [vmem:[#allocation10 + $0x18] sm:$0xff]  ;;  %s1107_s1 = sshll.u32 %s1874_s2, 5  ;;  %vm401_vm2 = vcmask 7168   ;;  %s1127_s23 = sshll.u32 %s1564_s27, 9 }
  0xca   : > { %411 = vperm.xlu0 %1253, %v408_v3   ;;  %1109 = vmatprep.subr.msk.mxu0 %vm420_vm0, %v415_v4  ;;  %v666_v10 = vld [vmem:[#allocation11 + $0x8] sm:$0xff]  ;;  %v668_v11 = vld [vmem:[#allocation11 + $0x18] sm:$0xff]  ;;  %v665_v12 = vld [vmem:[#allocation11] sm:$0xff]  ;;  %s1913_s8 = scalar_lea.vmem [#allocation14], %s1107_s1  ;;  %s1929_s9 = scalar_lea.vmem [#allocation13], %s1107_s1 }
  0xcb   : > { %636 = vperm.xlu1 %1254, %v626_v7   ;;  %1110 = vmatpush1.msk.msra.mxu0 %vm420_vm0, %v407_v2  ;;  %v667_v13 = vld [vmem:[#allocation11 + $0x10] sm:$0xff]  ;;  %v514_v21 = vld [vmem:[#allocation8] sm:$0xff]  ;;  %v515_v22 = vld [vmem:[#allocation8 + $0x8] sm:$0xff]  ;;  %403 = vst.msk [vmem:[%s1913_s8 + $0x8] sm:$0xff] %vm401_vm2, %v1582_v0  ;;  %s924_s19 = sshll.u32 %s1913_s8, 4  ;;  %s1958_s13 = scalar_lea.hbm %s2072_s7, %s1127_s23  ;;  %s1960_s19 = int_to_ptr.vmem [resolvable:$true] %s924_s19 }
  0xcc   : > { %1111 = vmatmul.mubr.msk.f32.vlgmr.msra.gmra.mrb[0].mxu0 %vm396_vm1, %v406_v5  ;;  %v516_v23 = vld [vmem:[#allocation8 + $0x10] sm:$0xff]  ;;  %v517_v24 = vld [vmem:[#allocation8 + $0x18] sm:$0xff]  ;;  %402 = vst.msk [vmem:[%s1913_s8] sm:$0xff] %vm401_vm2, %v1582_v0  ;;  %404 = vst.msk [vmem:[%s1913_s8 + $0x10] sm:$0xff] %vm401_vm2, %v1582_v0  ;;  %s895_s14 = scalar_lea.sflag [#allocation15], %s1874_s2  ;;  %s1446_s16 = scalar_lea.vmem %s1960_s19, 512 }
  0xcd   : > { %405 = vst.msk [vmem:[%s1913_s8 + $0x18] sm:$0xff] %vm401_vm2, %v1582_v0  ;;  %p1447_p6 = scmp.ne.s32.totalorder %s1960_s19, %s1446_s16  ;;  %p2101_p2 = scmp.ne.s32.totalorder %s2096_s12, 0 }
  0xce   : > { %631 = vperm.xlu0 %1253, %v625_v6   ;;  %397 = vst.msk [vmem:[%s1929_s9] sm:$0xff] %vm396_vm1, %v1582_v0  ;;  %398 = vst.msk [vmem:[%s1929_s9 + $0x8] sm:$0xff] %vm396_vm1, %v1582_v0  ;;  %s1584_s17 = smov [#allocation14]  }
  0xcf   : > { %641 = vperm.xlu1 %1254, %v627_v8   ;;  %399 = vst.msk [vmem:[%s1929_s9 + $0x10] sm:$0xff] %vm396_vm1, %v1582_v0  ;;  %400 = vst.msk [vmem:[%s1929_s9 + $0x18] sm:$0xff] %vm396_vm1, %v1582_v0  ;;  %p1448_p5 = pnand %p1447_p6, %p2101_p2  ;;  %s1450_s20 = sshll.u32 %s1584_s17, 4  ;;  %s1451_s20 = int_to_ptr.vmem [resolvable:$false] %s1450_s20 }
  0xd0   : > { %s1452_s10 = scalar_lea.vmem %s1451_s20, 1024  ;;  %p1453_p11 = scmp.lt.s32.totalorder %s1960_s19, %s1451_s20 }
  0xd1   : > { %p1449_p7 = pneg %p1448_p5  ;;  %p1454_p12 = scmp.lt.s32.totalorder %s1452_s10, %s1446_s16 }
  0xd2   : > { %646 = vperm.xlu0 %1253, %v628_v9  }
  0xd3   : > { %671 = vperm.xlu1 %1254, %v665_v12   ;;  %p1455_p0 = por %p1454_p12, %p1453_p11 }
  0xd5   : > { %p1456_p8 = pnand %p1455_p0, %p1449_p7 }
  0xd6   : > { %676 = vperm.xlu0 %1253, %v666_v10  }
  0xd7   : > { %681 = vperm.xlu1 %1254, %v667_v13  }
  0xda   : > { %686 = vperm.xlu0 %1253, %v668_v11  }
 0x149   : > { %v412_v14 = vpop.permute.xlu0 %411 }
 0x14a   : > { %v637_v39 = vpop.permute.xlu1 %636 }
 0x14d   : > { %v632_v41 = vpop.permute.xlu0 %631 }
 0x14e   : > { %v642_v44 = vpop.permute.xlu1 %641 }
 0x151   : > { %v647_v49 = vpop.permute.xlu0 %646 }
 0x152   : > { %v672_v53 = vpop.permute.xlu1 %671 }
 0x155   : > { %v677_v59 = vpop.permute.xlu0 %676 }
 0x156   : > { %v682_v1 = vpop.permute.xlu1 %681 }
 0x159   : > { %v687_v13 = vpop.permute.xlu0 %686 }
 0x19f   : > { %v491_v15 = vpop.f32.mrb[0].mxu0 }
 0x1a0   : > { %v492_v16 = vadd.f32 %v491_v15, %v412_v14  ;;  %v493_v17 = vpop.f32.mrb[1].mxu0 }
 0x1a1   : > { %v494_v18 = vadd.f32 %v493_v17, %v412_v14 }
 0x1a2   : > { %v496_v20 = vmax.f32 %v492_v16, 0.0 }
 0x1a3   : > { %v497_v19 = vmax.f32 %v494_v18, 0.0 }
 0x1a4   : > { %v498_v25 = vmul.f32 %v496_v20, %v496_v20 }
 0x1a5   : > { %1112 = vmatprep.subr.msk.mxu1 %vm420_vm0, %v497_v19  ;;  %771 = vmatprep.subr.mxu0 %v497_v19  ;;  %v499_v26 = vmul.f32 %v497_v19, %v497_v19 }
 0x1a6   : > { %1113 = vmatpush1.msk.msra.mxu1 %vm420_vm0, %v496_v20  ;;  %772 = vmatpush1.xpose.msra.mxu0 %v496_v20  ;;  %v500_v27 = vsel %vm420_vm0, %v498_v25, 0.0 }
 0x1a7   : > { %1114 = vmatmul.mubr.msk.f32.vlgmr.msra.gmra.mrb[0].mxu1 %vm396_vm1, %v514_v21  ;;  %v507_v28 = vsel %vm420_vm0, %v499_v26, 0.0  ;;  %v501_v29 = vrot.slane %v500_v27, 4 }
 0x1a8   : > { %606 = vmatprep.mubr.f32.mxu1 %v1582_v0  ;;  %v508_v30 = vrot.slane %v507_v28, 4 }
 0x1a9   : > { %v502_v31 = vadd.f32 %v501_v29, %v500_v27 }
 0x1aa   : > { %v509_v32 = vadd.f32 %v508_v30, %v507_v28 }
 0x1ab   : > { %1115 = vmatmul.mubr.msk.f32.gmra.mrb[2].mxu1 %vm396_vm1, %v515_v22  ;;  %v503_v33 = vrot.slane %v502_v31, 2 }
 0x1ac   : > { %612 = vmatprep.mubr.f32.mxu1 %v1582_v0  ;;  %v510_v34 = vrot.slane %v509_v32, 2 }
 0x1ad   : > { %v504_v35 = vadd.f32 %v503_v33, %v502_v31 }
 0x1ae   : > { %v511_v36 = vadd.f32 %v510_v34, %v509_v32 }
 0x1af   : > { %1116 = vmatmul.mubr.msk.f32.gmra.mrb[4].mxu1 %vm396_vm1, %v516_v23  ;;  %v505_v37 = vrot.slane %v504_v35, 1 }
 0x1b0   : > { %618 = vmatprep.mubr.f32.mxu1 %v1582_v0  ;;  %v512_v38 = vrot.slane %v511_v36, 1 }
 0x1b1   : > { %v506_v40 = vadd.f32 %v505_v37, %v504_v35 }
 0x1b2   : > { %v513_v42 = vadd.f32 %v512_v38, %v511_v36 }
 0x1b3   : > { %1117 = vmatmul.mubr.msk.f32.gmra.mrb[6].mxu1 %vm396_vm1, %v517_v24  ;;  %v649_v43 = vmul.f32 %v632_v41, %v506_v40  ;;  %v651_v51 = vmul.f32 %v637_v39, %v506_v40  ;;  %v653_v58 = vmul.f32 %v642_v44, %v506_v40  ;;  %v655_v5 = vmul.f32 %v647_v49, %v506_v40 }
 0x1b4   : > { %v650_v46 = vmul.f32 %v632_v41, %v513_v42  ;;  %v652_v52 = vmul.f32 %v637_v39, %v513_v42  ;;  %v654_v60 = vmul.f32 %v642_v44, %v513_v42  ;;  %v656_v9 = vmul.f32 %v647_v49, %v513_v42 }
 0x27a   : > { %v602_v45 = vpop.f32.mrb[0].mxu1 }
 0x27b   : > { %v657_v47 = vadd.f32 %v649_v43, %v602_v45  ;;  %v604_v48 = vpop.f32.mrb[1].mxu1 }
 0x27c   : > { %v658_v50 = vadd.f32 %v650_v46, %v604_v48 }
 0x27d   : > { %v689_v3 = vadd.f32 %v672_v53, %v657_v47 }
 0x27e   : > { %v608_v54 = vpop.f32.mrb[2].mxu1  ;;  %v690_v6 = vadd.f32 %v672_v53, %v658_v50 }
 0x27f   : > { %v659_v55 = vadd.f32 %v651_v51, %v608_v54  ;;  %v610_v56 = vpop.f32.mrb[3].mxu1 }
 0x280   : > { %v660_v57 = vadd.f32 %v652_v52, %v610_v56 }
 0x281   : > { %v691_v16 = vadd.f32 %v677_v59, %v659_v55 }
 0x282   : > { %v614_v61 = vpop.f32.mrb[4].mxu1  ;;  %v692_v18 = vadd.f32 %v677_v59, %v660_v57 }
 0x283   : > { %v661_v62 = vadd.f32 %v653_v58, %v614_v61  ;;  %v616_v63 = vpop.f32.mrb[5].mxu1 }
 0x284   : > { %v662_v2 = vadd.f32 %v654_v60, %v616_v63 }
 0x285   : > { %v693_v4 = vadd.f32 %v682_v1, %v661_v62 }
 0x286   : > { %v694_v7 = vadd.f32 %v682_v1, %v662_v2  ;;  %v620_v8 = vpop.f32.mrb[6].mxu1 }
 0x287   : > { %v697_v10 = vmax.f32 %v689_v3, %v693_v4  ;;  %v663_v11 = vadd.f32 %v655_v5, %v620_v8  ;;  %v622_v12 = vpop.f32.mrb[7].mxu1 }
 0x288   : > { %v706_v14 = vmax.f32 %v690_v6, %v694_v7  ;;  %v664_v15 = vadd.f32 %v656_v9, %v622_v12 }
 0x289   : > { %v695_v17 = vadd.f32 %v687_v13, %v663_v11 }
 0x28a   : > { %v696_v19 = vadd.f32 %v687_v13, %v664_v15 }
 0x28b   : > { %v698_v20 = vmax.f32 %v691_v16, %v695_v17 }
 0x28c   : > { %v707_v21 = vmax.f32 %v692_v18, %v696_v19 }
 0x28d   : > { %v699_v22 = vmax.f32 %v697_v10, %v698_v20 }
 0x28e   : > { %v708_v23 = vmax.f32 %v706_v14, %v707_v21 }
 0x28f   : > { %v700_v24 = vrot.slane %v699_v22, 4 }
 0x290   : > { %v709_v25 = vrot.slane %v708_v23, 4 }
 0x291   : > { %v701_v26 = vmax.f32 %v699_v22, %v700_v24 }
 0x292   : > { %v710_v27 = vmax.f32 %v708_v23, %v709_v25 }
 0x293   : > { %v702_v28 = vrot.slane %v701_v26, 2 }
 0x294   : > { %v711_v29 = vrot.slane %v710_v27, 2 }
 0x295   : > { %v703_v30 = vmax.f32 %v701_v26, %v702_v28 }
 0x296   : > { %v712_v31 = vmax.f32 %v710_v27, %v711_v29  ;;  %v865_v29 = vld [vmem:[%s1913_s8 + $0x8] sm:$0xff] }
 0x297   : > { %v704_v32 = vrot.slane %v703_v30, 1 }
 0x298   : > { %v713_v33 = vrot.slane %v712_v31, 1 }
 0x299   : > { %v705_v34 = vmax.f32 %v703_v30, %v704_v32  ;;  %v864_v30 = vld [vmem:[%s1913_s8] sm:$0xff] }
 0x29a   : > { %v714_v35 = vmax.f32 %v712_v31, %v713_v33 }
 0x29b   : > { %v715_v36 = vsub.f32 %v689_v3, %v705_v34  ;;  %v717_v37 = vsub.f32 %v691_v16, %v705_v34  ;;  %v719_v38 = vsub.f32 %v693_v4, %v705_v34  ;;  %v721_v39 = vsub.f32 %v695_v17, %v705_v34 }
 0x29c   : > { %v718_v40 = vsub.f32 %v692_v18, %v714_v35  ;;  %v720_v41 = vsub.f32 %v694_v7, %v714_v35  ;;  %v722_v42 = vsub.f32 %v696_v19, %v714_v35  ;;  %v716_v43 = vsub.f32 %v690_v6, %v714_v35  ;;  %v866_v35 = vld [vmem:[%s1913_s8 + $0x10] sm:$0xff] }
 0x29d   : > { %v723_v44 = vmul.f32 1.442695, %v715_v36  ;;  %v727_v45 = vmul.f32 1.442695, %v717_v37  ;;  %v731_v46 = vmul.f32 1.442695, %v719_v38 }
 0x29e   : > { %v735_v47 = vmul.f32 1.442695, %v721_v39  ;;  %v729_v48 = vmul.f32 1.442695, %v718_v40  ;;  %v725_v49 = vmul.f32 1.442695, %v716_v43 }
 0x29f   : > { %1256 = vpow2.f32 %v723_v44  ;;  %v733_v50 = vmul.f32 1.442695, %v720_v41  ;;  %v737_v51 = vmul.f32 1.442695, %v722_v42  ;;  %v867_v36 = vld [vmem:[%s1913_s8 + $0x18] sm:$0xff] }
 0x2a0   : > { %1258 = vpow2.f32 %v727_v45 }
 0x2a1   : > { %1260 = vpow2.f32 %v731_v46 }
 0x2a2   : > { %1262 = vpow2.f32 %v735_v47 }
 0x2a3   : > { %1264 = vpow2.f32 %v729_v48 }
 0x2a4   : > { %1266 = vpow2.f32 %v725_v49 }
 0x2a5   : > { %1268 = vpow2.f32 %v733_v50 }
 0x2a6   : > { %1270 = vpow2.f32 %v737_v51 }
 0x2a9   : > { %v1257_v52 = vpop.eup %1256 }
 0x2aa   : > { %v1259_v53 = vpop.eup %1258 }
 0x2ab   : > { %v739_v54 = vadd.f32 %v1259_v53, %v1257_v52  ;;  %v1261_v55 = vpop.eup %1260 }
 0x2ac   : > { %v1263_v56 = vpop.eup %1262 }
 0x2ad   : > { %v740_v57 = vadd.f32 %v1261_v55, %v739_v54  ;;  %v1265_v58 = vpop.eup %1264 }
 0x2ae   : > { %v1267_v60 = vpop.eup %1266 }
 0x2af   : > { %v741_v59 = vadd.f32 %v1263_v56, %v740_v57  ;;  %v748_v62 = vadd.f32 %v1267_v60, %v1265_v58  ;;  %v1269_v63 = vpop.eup %1268 }
 0x2b0   : > { %v1271_v3 = vpop.eup %1270 }
 0x2b1   : > { %v742_v61 = vrot.slane %v741_v59, 4  ;;  %v749_v2 = vadd.f32 %v1269_v63, %v748_v62 }
 0x2b3   : > { %v743_v1 = vadd.f32 %v742_v61, %v741_v59  ;;  %v750_v5 = vadd.f32 %v1271_v3, %v749_v2 }
 0x2b5   : > { %v744_v4 = vrot.slane %v743_v1, 2  ;;  %v751_v7 = vrot.slane %v750_v5, 4 }
 0x2b7   : > { %v745_v6 = vadd.f32 %v744_v4, %v743_v1  ;;  %v752_v9 = vadd.f32 %v751_v7, %v750_v5 }
 0x2b9   : > { %v746_v8 = vrot.slane %v745_v6, 1  ;;  %v753_v11 = vrot.slane %v752_v9, 2 }
 0x2bb   : > { %v747_v10 = vadd.f32 %v746_v8, %v745_v6  ;;  %v754_v12 = vadd.f32 %v753_v11, %v752_v9 }
 0x2bd   : > { %1272 = vrcp.f32 %v747_v10  ;;  %v755_v13 = vrot.slane %v754_v12, 1 }
 0x2bf   : > { %v756_v14 = vadd.f32 %v755_v13, %v754_v12 }
 0x2c1   : > { %1274 = vrcp.f32 %v756_v14 }
 0x2c7   : > { %v1273_v15 = vpop.eup %1272 }
 0x2c8   : > { %v759_v16 = vmul.f32 %v1273_v15, %v1257_v52  ;;  %v761_v17 = vmul.f32 %v1273_v15, %v1259_v53  ;;  %v763_v18 = vmul.f32 %v1273_v15, %v1261_v55  ;;  %v765_v19 = vmul.f32 %v1273_v15, %v1263_v56 }
 0x2cb   : > { %v1275_v20 = vpop.eup %1274 }
 0x2cc   : > { %v760_v21 = vmul.f32 %v1275_v20, %v1267_v60  ;;  %v762_v22 = vmul.f32 %v1275_v20, %v1265_v58  ;;  %v764_v23 = vmul.f32 %v1275_v20, %v1269_v63  ;;  %v766_v24 = vmul.f32 %v1275_v20, %v1271_v3 }
 0x2ce   : > { %835 = vmatprep.mubr.f32.mxu0 %v760_v21  ;;  %v871_v25 = vadd.f32 %v762_v22, %v761_v17  ;;  %v868_v26 = vadd.f32 %v760_v21, %v759_v16  ;;  %v874_v27 = vadd.f32 %v764_v23, %v763_v18  ;;  %v877_v28 = vadd.f32 %v766_v24, %v765_v19 }
 0x2cf   : > { %836 = vmatmul.mubr.f32.vlgmr.msra.gmra.mrb[2].mxu0 %v759_v16 }
 0x2d0   : > { %872 = vadd.xlane.f32.xlu0 %v871_v25  ;;  %869 = vadd.xlane.f32.xlu1 %v868_v26 }
 0x2d1   : > { %840 = vmatprep.mubr.f32.mxu0 %v762_v22 }
 0x2d3   : > { %841 = vmatmul.mubr.f32.gmra.mrb[4].mxu0 %v761_v17 }
 0x2d4   : > { %875 = vadd.xlane.f32.xlu0 %v874_v27  ;;  %878 = vadd.xlane.f32.xlu1 %v877_v28 }
 0x2d5   : > { %845 = vmatprep.mubr.f32.mxu0 %v764_v23 }
 0x2d7   : > { %846 = vmatmul.mubr.f32.gmra.mrb[6].mxu0 %v763_v18 }
 0x2d8   : > { %850 = vmatprep.mubr.f32.mxu0 %v766_v24 }
 0x2db   : > { %851 = vmatmul.mubr.f32.gmra.mrb[8].mxu0 %v765_v19 }
 0x35d   : > { %v873_v31 = vpop.xlane.xlu0 %872  ;;  %v870_v32 = vpop.xlane.xlu1 %869 }
 0x35e   : > { %v881_v33 = vadd.f32 %v873_v31, %v865_v29  ;;  %v880_v34 = vadd.f32 %v870_v32, %v864_v30 }
 0x360   : > { %886 = vst.msk [vmem:[%s1913_s8 + $0x8] sm:$0xff] %vm401_vm2, %v881_v33  ;;  %885 = vst.msk [vmem:[%s1913_s8] sm:$0xff] %vm401_vm2, %v880_v34 }
 0x361   : > { %v876_v0 = vpop.xlane.xlu0 %875  ;;  %v879_v37 = vpop.xlane.xlu1 %878 }
 0x362   : > { %v882_v38 = vadd.f32 %v876_v0, %v866_v35  ;;  %v883_v39 = vadd.f32 %v879_v37, %v867_v36 }
 0x364   : > { %887 = vst.msk [vmem:[%s1913_s8 + $0x10] sm:$0xff] %vm401_vm2, %v882_v38  ;;  %888 = vst.msk [vmem:[%s1913_s8 + $0x18] sm:$0xff] %vm401_vm2, %v883_v39 }
 0x365   : > { %1459 = shalt.err (!%p1456_p8)
}
 0x366   : > { %s1460_s30 = scalar_lea.hbm %s1958_s13, 512  ;;  %s1464_s15 = scalar_lea.hbm %s2072_s7, 1024 }
 0x367   : > { %p1461_p9 = scmp.ne.s32.totalorder %s1958_s13, %s1460_s30  ;;  %p1465_p10 = scmp.lt.u32.totalorder %s1958_s13, %s2072_s7 }
 0x368   : > { %p1466_p4 = scmp.lt.u32.totalorder %s1464_s15, %s1460_s30  ;;  %p1468_p6 = scmp.lt.u32.totalorder %s1460_s30, %s1958_s13 }
 0x369   : > { %p1462_p1 = pnand %p1461_p9, %p2101_p2 }
 0x36a   : > { %p1467_p13 = por %p1466_p4, %p1465_p10 }
 0x36b   : > { %p1463_p3 = pneg %p1462_p1 }
 0x36c   : > { %p1469_p5 = por %p1468_p6, %p1467_p13 }
 0x36e   : > { %p1470_p7 = pnand %p1469_p5, %p1463_p3 }
 0x370   : > { %1473 = shalt.err (!%p1470_p7)
}
 0x371   : > { %s1585_s16 = smov 128   ;;  %s1586_s20 = smov 8   ;;  %v767_v40 = vld [vmem:[%s1929_s9] sm:$0xff]  ;;  %v768_v44 = vld [vmem:[%s1929_s9 + $0x8] sm:$0xff]  ;;  %v769_v48 = vld [vmem:[%s1929_s9 + $0x10] sm:$0xff] }
 0x372   : > { %1152 = dma.vmem_to_hbm [thread:$0]  (%p2101_p2), %s1960_s19, 512, %s1958_s13, %s895_s14, %s1585_s16, %s1585_s16, %s1586_s20  }
 0x373   : > { %v770_v52 = vld [vmem:[%s1929_s9 + $0x18] sm:$0xff]  ;;  %s908_s19 = sshll.u32 %s1929_s9, 4  ;;  %s2009_s10 = scalar_lea.hbm %s2071_s6, %s1127_s23  ;;  %s2011_s19 = int_to_ptr.vmem [resolvable:$true] %s908_s19 }
 0x374   : > { %s890_s30 = scalar_lea.sflag [#allocation4], %s1874_s2  ;;  %s1474_s1 = scalar_lea.vmem %s2011_s19, 512 }
 0x375   : > { %p1475_p11 = scmp.ne.s32.totalorder %s2011_s19, %s1474_s1  ;;  %s1587_s8 = smov [#allocation13]  }
 0x376   : > { %s1478_s27 = sshll.u32 %s1587_s8, 4  ;;  %s1479_s27 = int_to_ptr.vmem [resolvable:$false] %s1478_s27 }
 0x377   : > { %p1476_p12 = pnand %p1475_p11, %p2101_p2  ;;  %s1480_s15 = scalar_lea.vmem %s1479_s27, 1024 }
 0x378   : > { %p1481_p8 = scmp.lt.s32.totalorder %s2011_s19, %s1479_s27  ;;  %p1482_p9 = scmp.lt.s32.totalorder %s1480_s15, %s1474_s1 }
 0x379   : > { %p1477_p0 = pneg %p1476_p12 }
 0x37a   : > { %p1483_p1 = por %p1482_p9, %p1481_p8 }
 0x37c   : > { %p1484_p3 = pnand %p1483_p1, %p1477_p0 }
 0x3a2   : > { %v837_v41 = vpop.f32.mrb[2].mxu0 }
 0x3a3   : > { %v856_v42 = vadd.f32 %v837_v41, %v767_v40  ;;  %v839_v43 = vpop.f32.mrb[3].mxu0 }
 0x3a5   : > { %860 = vst.msk [vmem:[%s1929_s9] sm:$0xff] %vm396_vm1, %v856_v42 }
 0x3a6   : > { %v842_v45 = vpop.f32.mrb[4].mxu0 }
 0x3a7   : > { %v857_v46 = vadd.f32 %v842_v45, %v768_v44  ;;  %v844_v47 = vpop.f32.mrb[5].mxu0 }
 0x3a9   : > { %861 = vst.msk [vmem:[%s1929_s9 + $0x8] sm:$0xff] %vm396_vm1, %v857_v46 }
 0x3aa   : > { %v847_v49 = vpop.f32.mrb[6].mxu0 }
 0x3ab   : > { %v858_v50 = vadd.f32 %v847_v49, %v769_v48  ;;  %v849_v51 = vpop.f32.mrb[7].mxu0 }
 0x3ad   : > { %862 = vst.msk [vmem:[%s1929_s9 + $0x10] sm:$0xff] %vm396_vm1, %v858_v50 }
 0x3ae   : > { %v852_v53 = vpop.f32.mrb[8].mxu0 }
 0x3af   : > { %v859_v54 = vadd.f32 %v852_v53, %v770_v52  ;;  %v854_v55 = vpop.f32.mrb[9].mxu0 }
 0x3b1   : > { %863 = vst.msk [vmem:[%s1929_s9 + $0x18] sm:$0xff] %vm396_vm1, %v859_v54 }
 0x3b2   : > { %1487 = shalt.err (!%p1484_p3)
}
 0x3b3   : > { %s1488_s9 = scalar_lea.hbm %s2009_s10, 512  ;;  %s1492_s17 = scalar_lea.hbm %s2071_s6, 1024 }
 0x3b4   : > { %p1489_p10 = scmp.ne.s32.totalorder %s2009_s10, %s1488_s9  ;;  %p1493_p6 = scmp.lt.u32.totalorder %s2009_s10, %s2071_s6 }
 0x3b5   : > { %p1494_p5 = scmp.lt.u32.totalorder %s1492_s17, %s1488_s9  ;;  %p1496_p11 = scmp.lt.u32.totalorder %s1488_s9, %s2009_s10 }
 0x3b6   : > { %p1490_p4 = pnand %p1489_p10, %p2101_p2 }
 0x3b7   : > { %p1495_p7 = por %p1494_p5, %p1493_p6 }
 0x3b8   : > { %p1491_p13 = pneg %p1490_p4 }
 0x3b9   : > { %p1497_p12 = por %p1496_p11, %p1495_p7 }
 0x3bb   : > { %p1498_p0 = pnand %p1497_p12, %p1491_p13 }
 0x3bd   : > { %1501 = shalt.err (!%p1498_p0)
}
 0x3be   : > { %1151 = dma.vmem_to_hbm [thread:$0]  (%p2101_p2), %s2011_s19, 512, %s2009_s10, %s890_s30, %s1585_s16, %s1585_s16, %s1586_s20  }
 0x3bf PF: > { %s939_s1 = sand.u32 1, %s1552_s24   ;;  %p2102_p8 = scmp.ne.s32.totalorder %s2097_s18, 0 }
 0x3c0   : > { %p2103_p9 = scmp.ge.s32.totalorder %s1572_s29, 2  ;;  %s940_s8 = scalar_lea.sflag [#allocation4], %s939_s1 }
 0x3c2   : > { %p1176_p1 = pnand %p2103_p9, %p2102_p8 }
 0x3c4   : > { %1543 = dma.done.wait (!%p1176_p1), %s940_s8, 512  }
 0x3c5   : > { %1545 = vsyncadd (!%p1176_p1), %s940_s8, 4294966784  ;;  %s949_s12 = scalar_lea.sflag [#allocation15], %s939_s1 }
 0x3c6   : > { %1547 = dma.done.wait (!%p1176_p1), %s949_s12, 512  }
 0x3c7   : > { %1549 = vsyncadd (!%p1176_p1), %s949_s12, 4294966784  ;;  %s30_s29 = sadd.s32 1, %s1572_s29   ;;  %s2104_s24 = smov %s1556_s25 }
 0x3c8   : > { %p27_p3 = scmp.ge.s32.totalorder %s30_s29, 4   ;;  %s2105_s25 = smov %s1560_s26 }
 0x3c9   : > { %s2106_s26 = smov %s1825_s11  ;;  %s2107_s27 = smov %s1568_s28 }
 0x3ca   : > { %s2108_s28 = smov %s2110_s22  ;;  %29 = sbr.rel (!%p27_p3) target bundleno = 14 (0xe), region = 130 }
 0x3d1   :  { %954 = vsyncpa [#allocation3], 1 }
 0x3d2   :  { %956 = vsyncpa [#allocation3 + $0x1], 1 }
 0x3d3   :  { %957 = vsyncpa [#allocation6], 1 }
 0x3d4   :  { %958 = vsyncpa [#allocation9], 1 }
 0x3d5   :  { %959 = vsyncpa [#allocation12], 1 }
 0x3d6   :  { %960 = vsyncpa [#allocation4], 1 }
 0x3d7   :  { %962 = vsyncpa [#allocation4 + $0x1], 1 }
 0x3d8   :  { %963 = vsyncpa [#allocation15], 1 }
 0x3d9   :  { %965 = vsyncpa [#allocation15 + $0x1], 1 }

// kernel: enc_module_forward.5
= control target key start
LH: loop header
LB: loop body
LE: loop exit
PB: predicated region body
PF: predicated region fallthrough
CT: control target
= control target key end

     0   :  { %7 = vsyncpa [#allocation3], 0  ;;  %s831_s0 = inlined_call_operand.hbm [shape: f32[2,4,256], index: 0, kind: input, shape index: {}]   ;;  %s832_s1 = inlined_call_operand.hbm [shape: f32[2,4,1], index: 1, kind: input, shape index: {}]   ;;  %s833_s2 = inlined_call_operand.hbm [shape: f32[2,4,256], index: 2, kind: output, shape index: {}]  }
   0x1   :  { %9 = vsyncpa [#allocation3 + $0x1], 0 }
   0x2   :  { %10 = vsyncpa [#allocation6], 0 }
   0x3   :  { %12 = vsyncpa [#allocation6 + $0x1], 0 }
   0x4   :  { %13 = vsyncpa [#allocation4], 0 }
   0x5   :  { %15 = vsyncpa [#allocation4 + $0x1], 0  ;;  %s616_s9 = smov 0   ;;  %s618_s10 = smov 0  }
   0x6   :  { %s620_s11 = smov 0   ;;  %s622_s12 = smov 0  }
   0x7   :  { %s624_s13 = smov 0   ;;  %s626_s14 = smov 0  }
   0x8 LB: > { %s358_s15 = sadd.s32 4294967295, %s594_s14   ;;  %s359_s16 = sadd.s32 4294967294, %s594_s14   ;;  %s594_s14 = sphi %s626_s14, %s21_s14   ;;  %s590_s13 = sphi %s624_s13, %s853_s13   ;;  %s586_s12 = sphi %s622_s12, %s852_s12   ;;  %s582_s11 = sphi %s620_s11, %s851_s11   ;;  %s578_s10 = sphi %s618_s10, %s850_s10   ;;  %s574_s9 = sphi %s616_s9, %s849_s9  }
   0x9   : > { %s33_s17 = sadd.s32 1, %s590_s13  ;;  %s42_s18 = sadd.s32 1, %s582_s11 }
   0xa   : > { %p35_p0 = scmp.ge.s32.totalorder %s33_s17, 2  ;;  %p49_p1 = scmp.ne.s32.totalorder %s582_s11, %s578_s10 }
   0xb   : > { %p50_p2 = scmp.eq.s32.totalorder %s594_s14, 0  ;;  %p55_p3 = scmp.ne.s32.totalorder %s578_s10, %s574_s9 }
   0xc   : > { %s855_s17 = smov (%p35_p0, %s33_s17), 0  ;;  %p56_p5 = scmp.eq.s32.totalorder %s358_s15, 0 }
   0xd   : > { %p657_p4 = por %p50_p2, %p49_p1  ;;  %s37_s20 = ssub.s32 %s590_s13, %s855_s17 }
   0xe   : > { %p107_p6 = scmp.eq.s32.totalorder %s358_s15, 1  ;;  %p40_p7 = scmp.eq.s32.totalorder %s37_s20, 0 }
   0xf   : > { %p663_p8 = por %p56_p5, %p55_p3  ;;  %p113_p10 = scmp.eq.s32.totalorder %s359_s16, 1 }
  0x10   : > { %p667_p9 = por %p107_p6, %p49_p1  ;;  %p395_p13 = scmp.lt.s32.totalorder %s594_s14, 2 }
  0x11   : > { %s837_s21 = scalar_select %p663_p8, 1, 0 }
  0x12   : > { %s838_s22 = scalar_select %p667_p9, 1, 0 }
  0x13   : > { %s672_s23 = scalar_select %p40_p7, %s582_s11, %s42_s18  }
  0x14   : > { %p674_p11 = por %p113_p10, %p55_p3  ;;  %s681_s25 = sand.u32 1, %s582_s11  }
  0x15   : > { %s362_s26 = sshll.u32 %s681_s25, 3  ;;  %s376_s27 = sshll.u32 %s590_s13, 7 }
  0x16   : > { %s839_s24 = scalar_select %p674_p11, 1, 0 }
  0x17   : > { %s688_s30 = scalar_lea.hbm %s831_s0, %s376_s27  ;;  %s137_s3 = scalar_lea.vmem [#allocation2], %s362_s26 }
  0x18   : > { %s147_s4 = sshll.u32 %s137_s3, 4  ;;  %p694_p0 = pnand %p395_p13, %p657_p4  ;;  %s690_s4 = int_to_ptr.vmem [resolvable:$true] %s147_s4 }
  0x19   : > { %s134_s6 = scalar_lea.sflag [#allocation3], %s681_s25  ;;  %s448_s7 = scalar_lea.hbm %s688_s30, 128 }
  0x1a   : > { %p449_p3 = scmp.ne.s32.totalorder %s688_s30, %s448_s7  ;;  %p450_p5 = pneg %p694_p0 }
  0x1b   : > { %s453_s16 = scalar_lea.hbm %s831_s0, 256  ;;  %p454_p4 = scmp.lt.u32.totalorder %s688_s30, %s831_s0 }
  0x1c   : > { %p451_p6 = pnand %p450_p5, %p449_p3  ;;  %p455_p10 = scmp.lt.u32.totalorder %s453_s16, %s448_s7 }
  0x1d   : > { %p457_p12 = scmp.lt.u32.totalorder %s448_s7, %s688_s30 }
  0x1e   : > { %p452_p7 = pneg %p451_p6  ;;  %p456_p13 = por %p455_p10, %p454_p4 }
  0x20   : > { %p458_p1 = por %p457_p12, %p456_p13 }
  0x22   : > { %p459_p2 = pnand %p458_p1, %p452_p7 }
  0x24   : > { %462 = shalt.err (!%p459_p2)
}
  0x25   : > { %s463_s20 = scalar_lea.vmem %s690_s4, 128  ;;  %s596_s26 = smov [#allocation2]  }
  0x26   : > { %p464_p3 = scmp.ne.s32.totalorder %s690_s4, %s463_s20  ;;  %s468_s27 = sshll.u32 %s596_s26, 4  ;;  %s469_s27 = int_to_ptr.vmem [resolvable:$false] %s468_s27 }
  0x27   : > { %s470_s28 = scalar_lea.vmem %s469_s27, 256  ;;  %p471_p9 = scmp.lt.s32.totalorder %s690_s4, %s469_s27 }
  0x28   : > { %p466_p6 = pnand %p464_p3, %p450_p5  ;;  %p472_p4 = scmp.lt.s32.totalorder %s470_s28, %s463_s20 }
  0x2a   : > { %p467_p11 = pneg %p466_p6  ;;  %p473_p10 = por %p472_p4, %p471_p9 }
  0x2c   : > { %p474_p12 = pnand %p473_p10, %p467_p11 }
  0x2e   : > { %477 = shalt.err (!%p474_p12)
}
  0x2f   : > { %387 = dma.hbm_to_vmem [thread:$0]  (!%p694_p0), %s688_s30, 128, %s690_s4, %s134_s6  }
  0x30   : > { %p841_p1 = scmp.lt.s32.totalorder %s594_s14, 3  ;;  %p842_p2 = scmp.ge.s32.totalorder %s594_s14, 1 }
  0x31   : > { %s365_s3 = sshll.u32 %s681_s25, 2  ;;  %s366_s7 = sshll.u32 %s590_s13, 6 }
  0x32   : > { %p730_p7 = pnand %p842_p2, %p841_p1  ;;  %s739_s16 = scalar_lea.hbm %s832_s1, %s366_s7 }
  0x33   : > { %s158_s18 = scalar_lea.vmem [#allocation5], %s365_s3  ;;  %s155_s30 = scalar_lea.sflag [#allocation6], %s681_s25 }
  0x34   : > { %s843_s29 = scalar_select %p730_p7, 1, 0 }
  0x35   : > { %s165_s19 = sshll.u32 %s158_s18, 4  ;;  %s478_s4 = scalar_lea.hbm %s739_s16, 64  ;;  %s166_s19 = int_to_ptr.vmem [resolvable:$true] %s165_s19 }
  0x36   : > { %p479_p9 = scmp.ne.s32.totalorder %s739_s16, %s478_s4  ;;  %s483_s26 = scalar_lea.hbm %s832_s1, 128 }
  0x37   : > { %p484_p3 = scmp.lt.u32.totalorder %s739_s16, %s832_s1  ;;  %p485_p6 = scmp.lt.u32.totalorder %s483_s26, %s478_s4 }
  0x38   : > { %p481_p11 = pnand %p479_p9, %p450_p5  ;;  %p487_p10 = scmp.lt.u32.totalorder %s478_s4, %s739_s16 }
  0x39   : > { %p486_p4 = por %p485_p6, %p484_p3 }
  0x3a   : > { %p482_p13 = pneg %p481_p11 }
  0x3b   : > { %p488_p12 = por %p487_p10, %p486_p4 }
  0x3d   : > { %p489_p1 = pnand %p488_p12, %p482_p13 }
  0x3f   : > { %492 = shalt.err (!%p489_p1)
}
  0x40   : > { %s493_s25 = scalar_lea.vmem %s166_s19, 64  ;;  %s597_s3 = smov [#allocation5]  }
  0x41   : > { %p494_p2 = scmp.ne.s32.totalorder %s166_s19, %s493_s25  ;;  %s498_s7 = sshll.u32 %s597_s3, 4  ;;  %s499_s7 = int_to_ptr.vmem [resolvable:$false] %s498_s7 }
  0x42   : > { %s500_s8 = scalar_lea.vmem %s499_s7, 128  ;;  %p501_p8 = scmp.lt.s32.totalorder %s166_s19, %s499_s7 }
  0x43   : > { %p496_p9 = pnand %p494_p2, %p450_p5  ;;  %p502_p7 = scmp.lt.s32.totalorder %s500_s8, %s493_s25 }
  0x45   : > { %p497_p11 = pneg %p496_p9  ;;  %p503_p3 = por %p502_p7, %p501_p8 }
  0x47   : > { %p504_p6 = pnand %p503_p3, %p497_p11 }
  0x49   : > { %507 = shalt.err (!%p504_p6)
}
  0x4a   : > { %390 = dma.hbm_to_vmem [thread:$0]  (!%p694_p0), %s739_s16, 64, %s166_s19, %s155_s30  }
  0x4b   : > { %p844_p13 = scmp.ne.s32.totalorder %s843_s29, 0 }
  0x4c   : > { %s764_s15 = sand.u32 (!%p844_p13), 1, %s578_s10   ;;  %p845_p5 = scmp.ne.s32.totalorder (!%p844_p13), %s837_s21, 0 }
  0x4d   : > { %174 = sbr.rel (%p844_p13) target bundleno = 238 (0xee), region = 28  ;;  %s368_s18 = sshll.u32 (!%p844_p13), %s764_s15, 3 }
  0x4e   : > { %s177_s4 = scalar_lea.sflag (!%p844_p13), [#allocation3], %s764_s15  ;;  %s180_s6 = scalar_lea.vmem (!%p844_p13), [#allocation2], %s368_s18 }
  0x54   : > { %561 = dma.done.wait (%p845_p5), %s177_s4, 128  }
  0x55   : > { %563 = vsyncadd (%p845_p5), %s177_s4, 4294967168  ;;  %s369_s5 = sshll.u32 %s764_s15, 2  ;;  %s186_s29 = scalar_lea.sflag [#allocation6], %s764_s15 }
  0x56   : > { %s189_s16 = scalar_lea.vmem [#allocation5], %s369_s5 }
  0x57   : > { %565 = dma.done.wait (%p845_p5), %s186_s29, 64  }
  0x58   : > { %567 = vsyncadd (%p845_p5), %s186_s29, 4294967232  ;;  %v598_v0 = vmov 0   ;;  %v218_v1 = vld [vmem:[%s189_s16] sm:$0xf]  ;;  %v599_v2 = vmov 839922192   ;;  %v226_v4 = vlaneseq }
  0x59   : > { %447 = vset.pattern.permute.xlu0 %v598_v0  ;;  %v224_v3 = vunpack.c.l.s4 %v599_v2  ;;  %v217_v9 = vld [vmem:[%s180_s6] sm:$0xff]  ;;  %s377_s19 = sshll.u32 %s586_s12, 7  ;;  %s214_s30 = scalar_lea.vmem [#allocation7], %s368_s18 }
  0x5a   : > { %221 = vperm.xlu0 %447, %v218_v1   ;;  %v227_v6 = vshrl.u32 %v226_v4, 7  ;;  %s251_s21 = sshll.u32 %s214_s30, 4  ;;  %s782_s27 = scalar_lea.hbm %s833_s2, %s377_s19  ;;  %s784_s21 = int_to_ptr.vmem [resolvable:$true] %s251_s21 }
  0x5b   : > { %v225_v5 = vunpack.c.0.s8 %v224_v3  ;;  %s235_s28 = scalar_lea.sflag [#allocation4], %s764_s15  ;;  %s508_s25 = scalar_lea.vmem %s784_s21, 128 }
  0x5c   : > { %p509_p8 = scmp.ne.s32.totalorder %s784_s21, %s508_s25  ;;  %p846_p0 = scmp.ne.s32.totalorder %s838_s22, 0 }
  0x5d   : > { %v228_v7 = vsub.s32 %v225_v5, %v227_v6  ;;  %s600_s12 = smov [#allocation7]  }
  0x5e   : > { %p510_p7 = pnand %p509_p8, %p846_p0  ;;  %s512_s3 = sshll.u32 %s600_s12, 4  ;;  %s513_s3 = int_to_ptr.vmem [resolvable:$false] %s512_s3 }
  0x5f   : > { %s514_s7 = scalar_lea.vmem %s513_s3, 256  ;;  %p515_p10 = scmp.lt.s32.totalorder %s784_s21, %s513_s3 }
  0x60   : > { %p511_p4 = pneg %p510_p7  ;;  %p516_p12 = scmp.lt.s32.totalorder %s514_s7, %s508_s25 }
  0x62   : > { %p517_p1 = por %p516_p12, %p515_p10 }
  0x64   : > { %p518_p2 = pnand %p517_p1, %p511_p4 }
  0xd9   : > { %v222_v8 = vpop.permute.xlu0 %221 }
  0xda   : > { %v229_v10 = vrot.slane %v222_v8, %v228_v7 }
  0xdc   : > { %v231_v11 = vmul.f32 %v229_v10, %v217_v9 }
  0xde   : > { %v232_v12 = vmax.f32 %v231_v11, 0.0 }
  0xe0   : > { %233 = vst [vmem:[%s214_s30] sm:$0xff] %v232_v12 }
  0xe1   : > { %521 = shalt.err (!%p518_p2)
}
  0xe2   : > { %s522_s8 = scalar_lea.hbm %s782_s27, 128  ;;  %s526_s4 = scalar_lea.hbm %s833_s2, 256 }
  0xe3   : > { %p523_p9 = scmp.ne.s32.totalorder %s782_s27, %s522_s8  ;;  %p527_p6 = scmp.lt.u32.totalorder %s782_s27, %s833_s2 }
  0xe4   : > { %p528_p13 = scmp.lt.u32.totalorder %s526_s4, %s522_s8  ;;  %p530_p8 = scmp.lt.u32.totalorder %s522_s8, %s782_s27 }
  0xe5   : > { %p524_p11 = pnand %p523_p9, %p846_p0 }
  0xe6   : > { %p529_p5 = por %p528_p13, %p527_p6 }
  0xe7   : > { %p525_p3 = pneg %p524_p11 }
  0xe8   : > { %p531_p7 = por %p530_p8, %p529_p5 }
  0xea   : > { %p532_p4 = pnand %p531_p7, %p525_p3 }
  0xec   : > { %535 = shalt.err (!%p532_p4)
}
  0xed   : > { %382 = dma.vmem_to_hbm [thread:$0]  (%p846_p0), %s784_s21, 128, %s782_s27, %s235_s28  }
  0xee PF: > { %s263_s29 = sand.u32 1, %s574_s9   ;;  %p847_p10 = scmp.ne.s32.totalorder %s839_s24, 0 }
  0xef   : > { %p848_p12 = scmp.ge.s32.totalorder %s594_s14, 2  ;;  %s264_s16 = scalar_lea.sflag [#allocation4], %s263_s29 }
  0xf1   : > { %p392_p1 = pnand %p848_p12, %p847_p10 }
  0xf3   : > { %569 = dma.done.wait (!%p392_p1), %s264_s16, 128  }
  0xf4   : > { %571 = vsyncadd (!%p392_p1), %s264_s16, 4294967168  ;;  %s21_s14 = sadd.s32 1, %s594_s14   ;;  %s849_s9 = smov %s578_s10 }
  0xf5   : > { %p18_p2 = scmp.ge.s32.totalorder %s21_s14, 4   ;;  %s850_s10 = smov %s582_s11 }
  0xf6   : > { %s851_s11 = smov %s672_s23  ;;  %s852_s12 = smov %s590_s13 }
  0xf7   : > { %s853_s13 = smov %s855_s17  ;;  %20 = sbr.rel (!%p18_p2) target bundleno = 8 (0x8), region = 86 }
  0xfe   :  { %269 = vsyncpa [#allocation3], 1 }
  0xff   :  { %271 = vsyncpa [#allocation3 + $0x1], 1 }
 0x100   :  { %272 = vsyncpa [#allocation6], 1 }
 0x101   :  { %274 = vsyncpa [#allocation6 + $0x1], 1 }
 0x102   :  { %275 = vsyncpa [#allocation4], 1 }
 0x103   :  { %277 = vsyncpa [#allocation4 + $0x1], 1 }

</bundles_post_ra>
